<compile_context>
chip_gen: v5e
topology: v5e:2x2
jax: 0.10.0
libtpu: 0.0.40
codegen_flags: <defaults>
</compile_context>

<pallas_src>
import functools

import jax
import jax.numpy as jnp
from jax import lax
from jax.experimental import pallas as pl
from jax.experimental.pallas import tpu as pltpu


# ----------------------------------------------------------------------------
# Pallas kernel 1: fused q/k/v 1x1 projection  (one MXU matmul per batch elem)
# ----------------------------------------------------------------------------
def _qkv_kernel(x_ref, w_ref, o_ref):
    # x_ref: (C, HW), w_ref: (3C, C), o_ref: (3C, HW)
    o_ref[...] = jnp.dot(
        w_ref[...], x_ref[...], preferred_element_type=jnp.float32
    ).astype(o_ref.dtype)


def qkv_proj_pallas(x, w_qkv):
    """x: (B, C, H, W); w_qkv: (3, C, C) -> (B, 3, C, H, W)."""
    B, C, H, W = x.shape
    HW = H * W
    xf = x.reshape(B, C, HW)
    w = w_qkv.reshape(3 * C, C)
    out = pl.pallas_call(
        _qkv_kernel,
        out_shape=jax.ShapeDtypeStruct((B, 3 * C, HW), x.dtype),
        grid_spec=pltpu.PrefetchScalarGridSpec(
            num_scalar_prefetch=0,
            grid=(B,),
            in_specs=[
                pl.BlockSpec((None, C, HW), lambda b: (b, 0, 0)),
                pl.BlockSpec((3 * C, C), lambda b: (0, 0)),
            ],
            out_specs=pl.BlockSpec((None, 3 * C, HW), lambda b: (b, 0, 0)),
        ),
        compiler_params=pltpu.CompilerParams(dimension_semantics=("parallel",)),
        cost_estimate=pl.CostEstimate(
            flops=2 * B * 3 * C * C * HW,
            transcendentals=0,
            bytes_accessed=4 * (B * C * HW + 3 * C * C + B * 3 * C * HW),
        ),
    )(xf, w)
    return out.reshape(B, 3, C, H, W)


# ----------------------------------------------------------------------------
# Pallas kernel 2: attention, restricted to the single output row (index 1)
# that the PyTorch forward actually consumes.
# ----------------------------------------------------------------------------
def _attn_row_kernel(q_ref, k_ref, v_ref, o_ref, *, scale):
    # q_ref: (1, Dh); k_ref, v_ref: (N, Dh); o_ref: (1, Dh)
    # att[n] = scale * sum_d q[d] * k[n, d]   -> VPU multiply + lane reduction
    att = jnp.sum(q_ref[...] * k_ref[...], axis=-1, keepdims=True) * scale  # (N,1)
    # out[d] = sum_n att[n] * v[n, d]         -> VPU multiply + sublane reduction
    o_ref[...] = jnp.sum(att * v_ref[...], axis=0, keepdims=True).astype(o_ref.dtype)


def attention_row_pallas(q, k, v, head_num, scale):
    """q,k,v: (B, N, C).  Returns the n=1 row of the per-head attention output,
    heads concatenated along channels: (B, C).  Equivalent to
      ((q.reshape(B,H,N,C/H) @ k.reshape(...).transpose(-2,-1) * scale)
        @ v.reshape(B,H,N,C/H)).transpose(1,2).reshape(B,N,C)[:, 1, :]
    without materializing the (B,H,N,N) attention matrix."""
    B, N, C = q.shape
    Dh = C // head_num
    qh = q.reshape(B, head_num, N, Dh)
    kh = k.reshape(B, head_num, N, Dh)
    vh = v.reshape(B, head_num, N, Dh)
    q_row = qh[:, :, 1:2, :]                                    # (B, H, 1, Dh)
    out = pl.pallas_call(
        functools.partial(_attn_row_kernel, scale=scale),
        out_shape=jax.ShapeDtypeStruct((B, head_num, 1, Dh), q.dtype),
        grid_spec=pltpu.PrefetchScalarGridSpec(
            num_scalar_prefetch=0,
            grid=(B, head_num),
            in_specs=[
                pl.BlockSpec((None, None, 1, Dh), lambda b, h: (b, h, 0, 0)),
                pl.BlockSpec((None, None, N, Dh), lambda b, h: (b, h, 0, 0)),
                pl.BlockSpec((None, None, N, Dh), lambda b, h: (b, h, 0, 0)),
            ],
            out_specs=pl.BlockSpec((None, None, 1, Dh), lambda b, h: (b, h, 0, 0)),
        ),
        compiler_params=pltpu.CompilerParams(
            dimension_semantics=("parallel", "parallel")),
        cost_estimate=pl.CostEstimate(
            flops=4 * B * head_num * N * Dh,
            transcendentals=0,
            bytes_accessed=4 * (2 * B * head_num * N * Dh + 2 * B * head_num * Dh),
        ),
    )(q_row, kh, vh)
    return out.reshape(B, C)


def attention_row_reference(q, k, v, head_num, scale):
    """Literal full N x N attention (as written in PyTorch), then row 1."""
    B, N, C = q.shape
    Dh = C // head_num
    qh = q.reshape(B, head_num, N, Dh)
    kh = k.reshape(B, head_num, N, Dh)
    vh = v.reshape(B, head_num, N, Dh)
    att = jnp.einsum("bhnd,bhmd->bhnm", qh, kh,
                     precision=lax.Precision.HIGHEST) * scale
    out = jnp.einsum("bhnm,bhmd->bhnd", att, vh,
                     precision=lax.Precision.HIGHEST)
    out = jnp.transpose(out, (0, 2, 1, 3)).reshape(B, N, C)
    return out[:, 1, :]


# ----------------------------------------------------------------------------
# Plain-JAX glue for the remaining (standard conv / data-movement) pieces.
# ----------------------------------------------------------------------------
def _unfold(x, ks):
    """nn.Unfold(kernel_size=ks, stride=1): (B,C,H,W) -> (B, C*ks*ks, L),
    channel ordering (c, ky, kx) as in PyTorch."""
    B, C, H, W = x.shape
    oh, ow = H - ks + 1, W - ks + 1
    patches = [x[:, :, ky:ky + oh, kx:kx + ow]
               for ky in range(ks) for kx in range(ks)]
    p = jnp.stack(patches, axis=2)                  # (B, C, ks*ks, oh, ow)
    return p.reshape(B, C * ks * ks, oh * ow)


def unfold_block(q_conv, k_conv, v_conv, *, wise, padding_att=1):
    """UnfoldBlock.forward: reflection-pad(1) -> unfold(ks=wise-4) -> + zero
    pos_embed -> prepend zero cls token.  pos_embed / cls tokens are freshly
    created zero Parameters in the PyTorch forward, so they contribute 0."""
    ks = wise - 4

    def one(t):
        tp = jnp.pad(t, ((0, 0), (0, 0),
                         (padding_att, padding_att), (padding_att, padding_att)),
                     mode="reflect")
        u = jnp.transpose(_unfold(tp, ks), (0, 2, 1))           # (B, L, C*ks*ks)
        cls = jnp.zeros((u.shape[0], 1, u.shape[2]), u.dtype)
        return jnp.concatenate([cls, u], axis=1)                # (B, L+1, C*ks*ks)

    return one(q_conv), one(k_conv), one(v_conv)


def build_dep_weight(out_planes, kc, dtype=jnp.float32):
    """ConvBlock.reset_parameters: kernel[i, i//kc, i%kc] = 1, tiled over
    out_planes -> shape (out_planes, kc*kc, kc, kc)."""
    k2 = kc * kc
    eye = jnp.eye(k2, dtype=dtype).reshape(k2, kc, kc)
    return jnp.tile(eye[None], (out_planes, 1, 1, 1))


def conv_block(x, q_conv, k_conv, v_conv, params, *, head_num=4, kernel_conv=5):
    """ConvBlock.forward: fc 1x1 -> permute/reshape -> fixed grouped dep_conv
    (bias zeroed/None after reset_parameters) -> BatchNorm2d with batch
    statistics (fresh module in training mode; gamma=1, beta=0, eps=1e-5)."""
    B, C, H, W = x.shape
    head_dim = C // head_num
    hw = H * W
    f_in = jnp.concatenate(
        [q_conv.reshape(B, head_num, head_dim, hw),
         k_conv.reshape(B, head_num, head_dim, hw),
         v_conv.reshape(B, head_num, head_dim, hw)], axis=1)    # (B, 3H, hd, hw)
    f_all = jnp.einsum("oi,bixy->boxy", params["w_fc"], f_in)   # (B, kc*kc, hd, hw)
    f_conv = jnp.transpose(f_all, (0, 2, 1, 3)).reshape(
        B, head_dim * kernel_conv * kernel_conv, H, W)
    out = lax.conv_general_dilated(
        f_conv, params["w_dep"], (1, 1), "VALID",
        dimension_numbers=("NCHW", "OIHW", "NCHW"),
        feature_group_count=head_dim)                           # (B, C, H-4, W-4)
    mean = out.mean(axis=(0, 2, 3), keepdims=True)
    var = out.var(axis=(0, 2, 3), keepdims=True)
    return (out - mean) * lax.rsqrt(var + 1e-5)


def attention_forward(params, x, *, i=2, head_num=4, use_pallas=True):
    """Forward pass of the PyTorch `Attention` module (rate1 = rate2 = 0.5)."""
    B, in_planes, H, W = x.shape
    size = 19 if i == 1 else 17
    head_dim = in_planes // head_num
    scale = float(head_dim) ** -0.5

    # qkv1: three bias-free 1x1 convs
    if use_pallas:
        qkv = qkv_proj_pallas(x, params["w_qkv"])
    else:
        qkv = jnp.einsum(
            "oc,bchw->bohw",
            params["w_qkv"].reshape(3 * in_planes, in_planes), x
        ).reshape(B, 3, in_planes, H, W)
    q_conv, k_conv, v_conv = qkv[:, 0], qkv[:, 1], qkv[:, 2]

    # UnfoldBlock branch (kernel_size = `size` for this i)
    q_u, k_u, v_u = unfold_block(q_conv, k_conv, v_conv, wise=size)

    # ConvBlock branch
    out_conv = conv_block(x, q_conv, k_conv, v_conv, params, head_num=head_num)

    # Attention branch: only row 1 of the per-head output is consumed
    if use_pallas:
        attn_row = attention_row_pallas(q_u, k_u, v_u, head_num, scale)
    else:
        attn_row = attention_row_reference(q_u, k_u, v_u, head_num, scale)
    out_attn = attn_row.reshape(B, in_planes, size - 4, size - 4)
    out_attn = lax.conv_general_dilated(
        out_attn, params["w_global"], (1, 1), ((1, 1), (1, 1)),
        dimension_numbers=("NCHW", "OIHW", "NCHW"))

    # rate1 and rate2 are both filled with 0.5 in the PyTorch forward
    return out_conv * 0.5 + out_attn * 0.5


if __name__ == "__main__":
    key = jax.random.PRNGKey(0)
    k_x, k_qkv, k_fc, k_g = jax.random.split(key, 4)

    B, in_planes, head_num, i = 2, 64, 4, 2
    size = 17                           # the i=2 branch of the module
    kernel_conv = 5

    x = jax.random.normal(k_x, (B, in_planes, size, size), dtype=jnp.float32)
    params = {
        "w_qkv": jax.random.normal(k_qkv, (3, in_planes, in_planes),
                                   dtype=jnp.float32) / jnp.sqrt(float(in_planes)),
        "w_fc": jax.random.normal(k_fc, (kernel_conv * kernel_conv, 3 * head_num),
                                  dtype=jnp.float32) / jnp.sqrt(float(3 * head_num)),
        "w_dep": build_dep_weight(in_planes, kernel_conv),
        "w_global": jax.random.normal(k_g, (in_planes, in_planes, 3, 3),
                                      dtype=jnp.float32)
                    / jnp.sqrt(float(in_planes * 9)),
    }

    fwd = jax.jit(functools.partial(attention_forward, i=i, head_num=head_num,
                                    use_pallas=True))
    ref = jax.jit(functools.partial(attention_forward, i=i, head_num=head_num,
                                    use_pallas=False))

    out = jax.block_until_ready(fwd(params, x))
    out_ref = jax.block_until_ready(ref(params, x))
    assert out.shape == (B, in_planes, size - 4, size - 4)
    assert out.dtype == jnp.float32

    # End-to-end check.  The only deliberate numeric difference between the
    # two paths is the qkv matmul (Pallas MXU vs XLA einsum, both default f32
    # precision on TPU, i.e. bf16 passes), so allow a few percent.
    rel = jnp.max(jnp.abs(out - out_ref)) / (jnp.max(jnp.abs(out_ref)) + 1e-6)
    assert float(rel) < 5e-2, f"forward mismatch: rel={float(rel):.3e}"

    # Tight unit check of the attention kernel (exact-f32 VPU reductions)
    # against the literal full N x N attention on identical inputs; this also
    # validates that computing only row 1 reproduces out_attn[:, 1, :].
    @jax.jit
    def _attn_pair(params, x):
        qkv = jnp.einsum("oc,bchw->bohw",
                         params["w_qkv"].reshape(3 * in_planes, in_planes),
                         x).reshape(B, 3, in_planes, size, size)
        q_u, k_u, v_u = unfold_block(qkv[:, 0], qkv[:, 1], qkv[:, 2], wise=size)
        scl = float(in_planes // head_num) ** -0.5
        return (attention_row_pallas(q_u, k_u, v_u, head_num, scl),
                attention_row_reference(q_u, k_u, v_u, head_num, scl))

    row_p, row_r = jax.block_until_ready(_attn_pair(params, x))
    rel_attn = jnp.max(jnp.abs(row_p - row_r)) / (jnp.max(jnp.abs(row_r)) + 1e-6)
    assert float(rel_attn) < 1e-3, f"attention kernel mismatch: rel={float(rel_attn):.3e}"

    print("KERNEL_OK")
</pallas_src>

<mosaic_0001>
module attributes {stable_mosaic.version = 11 : i64} {
  func.func @_qkv_kernel(%arg0: i32, %arg1: memref<1x64x289xf32, #tpu.memory_space<vmem>>, %arg2: memref<192x64xf32, #tpu.memory_space<vmem>>, %arg3: memref<1x192x289xf32, #tpu.memory_space<vmem>>) attributes {dimension_semantics = [#tpu.dimension_semantics<parallel>], iteration_bounds = array<i64: 2>, scalar_prefetch = 0 : i64, scratch_operands = 0 : i64, tpu.core_type = #tpu.core_type<tc>, window_params = [{transform_indices = @transform_0, window_bounds = array<i64: 1, 64, 289>}, {pipeline_mode = #tpu.pipeline_mode<synchronous>, transform_indices = @transform_1, window_bounds = array<i64: 192, 64>}, {transform_indices = @transform_2, window_bounds = array<i64: 1, 192, 289>}]} {
    %c0 = arith.constant 0 : index
    %c0_0 = arith.constant 0 : index
    %0 = vector.load %arg2[%c0, %c0_0] : memref<192x64xf32, #tpu.memory_space<vmem>>, vector<192x64xf32>
    %c0_1 = arith.constant 0 : index
    %c0_2 = arith.constant 0 : index
    %c0_3 = arith.constant 0 : index
    %1 = vector.load %arg1[%c0_1, %c0_2, %c0_3] : memref<1x64x289xf32, #tpu.memory_space<vmem>>, vector<1x64x289xf32>
    %2 = vector.shape_cast %1 : vector<1x64x289xf32> to vector<64x289xf32>
    %cst = arith.constant dense<0.000000e+00> : vector<192x289xf32>
    %3 = tpu.matmul %0, %2, %cst {dimension_numbers = #tpu.dot_dimension_numbers<[1], [0], [0], [1], [0, 0, 1, 1], [], []>} : vector<192x64xf32>, vector<64x289xf32>, vector<192x289xf32> -> vector<192x289xf32>
    %c0_4 = arith.constant 0 : index
    %c0_5 = arith.constant 0 : index
    %c0_6 = arith.constant 0 : index
    %4 = vector.load %arg3[%c0_4, %c0_5, %c0_6] : memref<1x192x289xf32, #tpu.memory_space<vmem>>, vector<1x192x289xf32>
    %5 = vector.shape_cast %4 : vector<1x192x289xf32> to vector<192x289xf32>
    %6 = vector.shape_cast %3 : vector<192x289xf32> to vector<1x192x289xf32>
    tpu.vector_store %arg3[%c0_4, %c0_5, %c0_6], %6 {strides = array<i32>} : memref<1x192x289xf32, #tpu.memory_space<vmem>>, vector<1x192x289xf32>,
    return
  }
  func.func @transform_0(%arg0: i32) -> (i32, i32, i32) {
    %c0_i32 = arith.constant 0 : i32
    %c0_i32_0 = arith.constant 0 : i32
    %c0_i32_1 = arith.constant 0 : i32
    return %arg0, %c0_i32, %c0_i32_0 : i32, i32, i32
  }
  func.func @transform_1(%arg0: i32) -> (i32, i32) {
    %c0_i32 = arith.constant 0 : i32
    %c0_i32_0 = arith.constant 0 : i32
    %c0_i32_1 = arith.constant 0 : i32
    return %c0_i32, %c0_i32_0 : i32, i32
  }
  func.func @transform_2(%arg0: i32) -> (i32, i32, i32) {
    %c0_i32 = arith.constant 0 : i32
    %c0_i32_0 = arith.constant 0 : i32
    %c0_i32_1 = arith.constant 0 : i32
    return %arg0, %c0_i32, %c0_i32_0 : i32, i32, i32
  }
}

module attributes {stable_mosaic.version = 11 : i64} {
  func.func @_attn_row_kernel(%arg0: i32, %arg1: i32, %arg2: memref<1x1x1x2704xf32, #tpu.memory_space<vmem>>, %arg3: memref<1x1x50x2704xf32, #tpu.memory_space<vmem>>, %arg4: memref<1x1x50x2704xf32, #tpu.memory_space<vmem>>, %arg5: memref<1x1x1x2704xf32, #tpu.memory_space<vmem>>) attributes {dimension_semantics = [#tpu.dimension_semantics<parallel>, #tpu.dimension_semantics<parallel>], iteration_bounds = array<i64: 2, 4>, scalar_prefetch = 0 : i64, scratch_operands = 0 : i64, tpu.core_type = #tpu.core_type<tc>, window_params = [{transform_indices = @transform_0, window_bounds = array<i64: 1, 1, 1, 2704>}, {transform_indices = @transform_1, window_bounds = array<i64: 1, 1, 50, 2704>}, {transform_indices = @transform_2, window_bounds = array<i64: 1, 1, 50, 2704>}, {transform_indices = @transform_3, window_bounds = array<i64: 1, 1, 1, 2704>}]} {
    %c0 = arith.constant 0 : index
    %c0_0 = arith.constant 0 : index
    %c0_1 = arith.constant 0 : index
    %c0_2 = arith.constant 0 : index
    %0 = vector.load %arg2[%c0, %c0_0, %c0_1, %c0_2] : memref<1x1x1x2704xf32, #tpu.memory_space<vmem>>, vector<1x1x1x2704xf32>
    %1 = vector.shape_cast %0 : vector<1x1x1x2704xf32> to vector<1x2704xf32>
    %c0_3 = arith.constant 0 : index
    %c0_4 = arith.constant 0 : index
    %c0_5 = arith.constant 0 : index
    %c0_6 = arith.constant 0 : index
    %2 = vector.load %arg3[%c0_3, %c0_4, %c0_5, %c0_6] : memref<1x1x50x2704xf32, #tpu.memory_space<vmem>>, vector<1x1x50x2704xf32>
    %3 = vector.shape_cast %2 : vector<1x1x50x2704xf32> to vector<50x2704xf32>
    %4 = vector.broadcast %1 : vector<1x2704xf32> to vector<50x2704xf32>
    %5 = arith.mulf %4, %3 : vector<50x2704xf32>
    %cst = arith.constant dense<0.000000e+00> : vector<50xf32>
    %6 = vector.multi_reduction <add>, %5, %cst [1] : vector<50x2704xf32> to vector<50xf32>
    %7 = vector.shape_cast %6 : vector<50xf32> to vector<50x1xf32>
    %cst_7 = arith.constant 2.500000e-01 : f32
    %8 = vector.broadcast %cst_7 : f32 to vector<50x1xf32>
    %9 = arith.mulf %7, %8 : vector<50x1xf32>
    %c0_8 = arith.constant 0 : index
    %c0_9 = arith.constant 0 : index
    %c0_10 = arith.constant 0 : index
    %c0_11 = arith.constant 0 : index
    %10 = vector.load %arg4[%c0_8, %c0_9, %c0_10, %c0_11] : memref<1x1x50x2704xf32, #tpu.memory_space<vmem>>, vector<1x1x50x2704xf32>
    %11 = vector.shape_cast %10 : vector<1x1x50x2704xf32> to vector<50x2704xf32>
    %12 = vector.broadcast %9 : vector<50x1xf32> to vector<50x2704xf32>
    %13 = arith.mulf %12, %11 : vector<50x2704xf32>
    %cst_12 = arith.constant dense<0.000000e+00> : vector<2704xf32>
    %14 = vector.multi_reduction <add>, %13, %cst_12 [0] : vector<50x2704xf32> to vector<2704xf32>
    %15 = vector.shape_cast %14 : vector<2704xf32> to vector<1x2704xf32>
    %c0_13 = arith.constant 0 : index
    %c0_14 = arith.constant 0 : index
    %c0_15 = arith.constant 0 : index
    %c0_16 = arith.constant 0 : index
    %16 = vector.load %arg5[%c0_13, %c0_14, %c0_15, %c0_16] : memref<1x1x1x2704xf32, #tpu.memory_space<vmem>>, vector<1x1x1x2704xf32>
    %17 = vector.shape_cast %16 : vector<1x1x1x2704xf32> to vector<1x2704xf32>
    %18 = vector.shape_cast %15 : vector<1x2704xf32> to vector<1x1x1x2704xf32>
    tpu.vector_store %arg5[%c0_13, %c0_14, %c0_15, %c0_16], %18 {strides = array<i32>} : memref<1x1x1x2704xf32, #tpu.memory_space<vmem>>, vector<1x1x1x2704xf32>,
    return
  }
  func.func @transform_0(%arg0: i32, %arg1: i32) -> (i32, i32, i32, i32) {
    %c0_i32 = arith.constant 0 : i32
    %c0_i32_0 = arith.constant 0 : i32
    %c0_i32_1 = arith.constant 0 : i32
    return %arg0, %arg1, %c0_i32, %c0_i32_0 : i32, i32, i32, i32
  }
  func.func @transform_1(%arg0: i32, %arg1: i32) -> (i32, i32, i32, i32) {
    %c0_i32 = arith.constant 0 : i32
    %c0_i32_0 = arith.constant 0 : i32
    %c0_i32_1 = arith.constant 0 : i32
    return %arg0, %arg1, %c0_i32, %c0_i32_0 : i32, i32, i32, i32
  }
  func.func @transform_2(%arg0: i32, %arg1: i32) -> (i32, i32, i32, i32) {
    %c0_i32 = arith.constant 0 : i32
    %c0_i32_0 = arith.constant 0 : i32
    %c0_i32_1 = arith.constant 0 : i32
    return %arg0, %arg1, %c0_i32, %c0_i32_0 : i32, i32, i32, i32
  }
  func.func @transform_3(%arg0: i32, %arg1: i32) -> (i32, i32, i32, i32) {
    %c0_i32 = arith.constant 0 : i32
    %c0_i32_0 = arith.constant 0 : i32
    %c0_i32_1 = arith.constant 0 : i32
    return %arg0, %arg1, %c0_i32, %c0_i32_0 : i32, i32, i32, i32
  }
}

</mosaic_0001>

<bundles_post_ra>
// kernel: attention_forward.2
= control target key start
LH: loop header
LB: loop body
LE: loop exit
PB: predicated region body
PF: predicated region fallthrough
CT: control target
= control target key end

     0   :  { %7 = vsyncpa [#allocation3], 0  ;;  %s879_s9 = smov 0   ;;  %s1153_s0 = inlined_call_operand.vmem [shape: f32[2,64,289], index: 0, kind: input, shape index: {}]   ;;  %s1154_s1 = inlined_call_operand.hbm [shape: f32[192,64], index: 1, kind: input, shape index: {}]   ;;  %s1155_s2 = inlined_call_operand.vmem [shape: f32[2,192,289], index: 2, kind: output, shape index: {}]  }
   0x1 LB: > { %s102_s12 = sshll.u32 %s1154_s1, 4  ;;  %s689_s13 = sadd.s32 4294967295, %s859_s9   ;;  %s859_s9 = sphi %s879_s9, %s13_s9   ;;  %s103_s12 = int_to_ptr.hbm [resolvable:$true] %s102_s12 }
   0x2   : > { %p691_p0 = scmp.ge.s32.totalorder %s859_s9, 1  ;;  %p91_p1 = scmp.lt.s32.totalorder %s859_s9, 3 }
   0x3   : > { %p806_p2 = scmp.eq.s32.totalorder %s689_s13, 0  ;;  %s861_s14 = smov [#allocation2]  }
   0x4   : > { %p92_p3 = pnand %p691_p0, %p91_p1  ;;  %s104_s15 = sshll.u32 %s861_s14, 4  ;;  %s105_s15 = int_to_ptr.vmem [resolvable:$true] %s104_s15 }
   0x5   : > { %s862_s16 = smov 128   ;;  %s863_s17 = smov 8  }
   0x6   : > { %p802_p4 = pneg %p92_p3  ;;  %128 = sbr.rel (%p92_p3) target bundleno = 304 (0x130), region = 28 }
   0x8   : > { %p803_p5 = pnand %p806_p2, %p802_p4 }
   0xa   : > { %805 = dma.hbm_to_vmem [thread:$0]  (!%p803_p5), %s103_s12, 3072, %s105_s15, [#allocation3], %s862_s16, %s862_s16, %s863_s17  }
   0xb   : > { %854 = dma.done.wait (%p806_p2), [#allocation3], 3072  }
   0xc   : > { %856 = vsyncadd (%p806_p2), [#allocation3], 4294964224  ;;  %p151_p6 = scmp.lt.s32.totalorder %s689_s13, 1  ;;  %v938_v22 = vld [vmem:[#allocation2 + $0x90] sm:$0xff]  ;;  %vm209_vm0 = vcmask 523264   ;;  %v161_v23 = vld [vmem:[#allocation2] sm:$0xff] }
   0xd   : > { %v947_v26 = vld [vmem:[#allocation2 + $0x98] sm:$0xff]  ;;  %v162_v27 = vld [vmem:[#allocation2 + $0x8] sm:$0xff]  ;;  %v954_v28 = vld [vmem:[#allocation2 + $0xa0] sm:$0xff]  ;;  %vm551_vm1 = vcmask 269312  }
   0xe   : > { %s1157_s13 = smov (!%p151_p6, %s689_s13), 1  ;;  %v163_v29 = vld [vmem:[#allocation2 + $0x10] sm:$0xff]  ;;  %v963_v30 = vld [vmem:[#allocation2 + $0xa8] sm:$0xff]  ;;  %v164_v31 = vld [vmem:[#allocation2 + $0x18] sm:$0xff] }
   0xf   : > { %s796_s18 = smul.u32 192, %s1157_s13  ;;  %v973_v32 = vld [vmem:[#allocation2 + $0xb0] sm:$0xff]  ;;  %v165_v33 = vld [vmem:[#allocation2 + $0x20] sm:$0xff]  ;;  %v981_v34 = vld [vmem:[#allocation2 + $0xb8] sm:$0xff] }
  0x10   : > { %v166_v35 = vld [vmem:[#allocation2 + $0x28] sm:$0xff]  ;;  %v167_v36 = vld [vmem:[#allocation2 + $0x30] sm:$0xff]  ;;  %v168_v37 = vld [vmem:[#allocation2 + $0x38] sm:$0xff]  ;;  %s797_s22 = smul.u32 576, %s1157_s13 }
  0x11   : > { %s896_s21 = scalar_lea.vmem %s1153_s0, %s796_s18  ;;  %v169_v38 = vld [vmem:[#allocation2 + $0x40] sm:$0xff]  ;;  %v170_v39 = vld [vmem:[#allocation2 + $0x48] sm:$0xff]  ;;  %v171_v40 = vld [vmem:[#allocation2 + $0x50] sm:$0xff] }
  0x12   : > { %v206_v0 = vld [vmem:[%s896_s21 + $0xa8] sm:$0xff]  ;;  %v900_v1 = vld [vmem:[%s896_s21 + $0xb8] sm:$0xff]  ;;  %v203_v2 = vld [vmem:[%s896_s21 + $0x90] sm:$0xff]  ;;  %s1042_s25 = scalar_lea.vmem %s1155_s2, %s797_s22 }
  0x13   : > { %772 = vmatpush.msra.mxu3 %v206_v0  ;;  %468 = vmatpush.msra.mxu2 %v900_v1  ;;  %v905_v3 = vld [vmem:[%s896_s21 + $0xa0] sm:$0xff]  ;;  %v200_v4 = vld [vmem:[%s896_s21 + $0x78] sm:$0xff]  ;;  %v909_v5 = vld [vmem:[%s896_s21 + $0x88] sm:$0xff] }
  0x14   : > { %290 = vmatpush.msra.mxu0 %v206_v0  ;;  %v207_v6 = vld [vmem:[%s896_s21 + $0xb0] sm:$0xff]  ;;  %v204_v7 = vld [vmem:[%s896_s21 + $0x98] sm:$0xff]  ;;  %v197_v8 = vld [vmem:[%s896_s21 + $0x60] sm:$0xff] }
  0x15   : > { %773 = vmatpush.msra.mxu3 %v203_v2  ;;  %469 = vmatpush.msra.mxu2 %v905_v3  ;;  %v916_v9 = vld [vmem:[%s896_s21 + $0x70] sm:$0xff]  ;;  %v201_v10 = vld [vmem:[%s896_s21 + $0x80] sm:$0xff]  ;;  %v194_v11 = vld [vmem:[%s896_s21 + $0x48] sm:$0xff] }
  0x16   : > { %379 = vmatpush.msra.mxu1 %v207_v6  ;;  %291 = vmatpush.msra.mxu0 %v203_v2  ;;  %v922_v12 = vld [vmem:[%s896_s21 + $0x58] sm:$0xff]  ;;  %v198_v13 = vld [vmem:[%s896_s21 + $0x68] sm:$0xff]  ;;  %v191_v14 = vld [vmem:[%s896_s21 + $0x30] sm:$0xff] }
  0x17   : > { %774 = vmatpush.msra.mxu3 %v200_v4  ;;  %470 = vmatpush.msra.mxu2 %v909_v5  ;;  %v928_v15 = vld [vmem:[%s896_s21 + $0x40] sm:$0xff]  ;;  %v195_v16 = vld [vmem:[%s896_s21 + $0x50] sm:$0xff]  ;;  %v188_v17 = vld [vmem:[%s896_s21 + $0x18] sm:$0xff] }
  0x18   : > { %380 = vmatpush.msra.mxu1 %v204_v7  ;;  %292 = vmatpush.msra.mxu0 %v200_v4  ;;  %v190_v18 = vld [vmem:[%s896_s21 + $0x28] sm:$0xff]  ;;  %v192_v19 = vld [vmem:[%s896_s21 + $0x38] sm:$0xff]  ;;  %v185_v20 = vld [vmem:[%s896_s21] sm:$0xff] }
  0x19   : > { %775 = vmatpush.msra.mxu3 %v197_v8  ;;  %471 = vmatpush.msra.mxu2 %v916_v9  ;;  %v187_v21 = vld [vmem:[%s896_s21 + $0x10] sm:$0xff]  ;;  %v189_v24 = vld [vmem:[%s896_s21 + $0x20] sm:$0xff]  ;;  %v186_v25 = vld [vmem:[%s896_s21 + $0x8] sm:$0xff] }
  0x1a   : > { %381 = vmatpush.msra.mxu1 %v201_v10  ;;  %293 = vmatpush.msra.mxu0 %v197_v8  ;;  %v172_v41 = vld [vmem:[#allocation2 + $0x58] sm:$0xff]  ;;  %v173_v42 = vld [vmem:[#allocation2 + $0x60] sm:$0xff]  ;;  %v174_v43 = vld [vmem:[#allocation2 + $0x68] sm:$0xff] }
  0x1b   : > { %776 = vmatpush.msra.mxu3 %v194_v11  ;;  %472 = vmatpush.msra.mxu2 %v922_v12  ;;  %v175_v44 = vld [vmem:[#allocation2 + $0x70] sm:$0xff]  ;;  %v176_v45 = vld [vmem:[#allocation2 + $0x78] sm:$0xff]  ;;  %v177_v46 = vld [vmem:[#allocation2 + $0x80] sm:$0xff] }
  0x1c   : > { %382 = vmatpush.msra.mxu1 %v198_v13  ;;  %294 = vmatpush.msra.mxu0 %v194_v11  ;;  %v178_v51 = vld [vmem:[#allocation2 + $0x88] sm:$0xff] }
  0x1d   : > { %777 = vmatpush.msra.mxu3 %v191_v14  ;;  %473 = vmatpush.msra.mxu2 %v928_v15 }
  0x1e   : > { %383 = vmatpush.msra.mxu1 %v195_v16  ;;  %295 = vmatpush.msra.mxu0 %v191_v14 }
  0x1f   : > { %778 = vmatpush.msra.mxu3 %v188_v17  ;;  %474 = vmatpush.msra.mxu2 %v190_v18 }
  0x20   : > { %384 = vmatpush.msra.mxu1 %v192_v19  ;;  %296 = vmatpush.msra.mxu0 %v188_v17 }
  0x21   : > { %779 = vmatpush.msra.mxu3 %v185_v20  ;;  %475 = vmatpush.msra.mxu2 %v187_v21 }
  0x22   : > { %716 = vmatmul.msk.f32.vlgmr.msra.gmra.mxu3 %vm209_vm0, %v938_v22  ;;  %746 = vmatmul.msk.f32.vlgmr.msra.gmra.mxu2 %vm209_vm0, %v161_v23 }
  0x23   : > { %780 = vmatpush.msrb.mxu3 %v207_v6  ;;  %385 = vmatpush.msra.mxu1 %v189_v24 }
  0x24   : > { %297 = vmatpush.msra.mxu0 %v185_v20 }
  0x25   : > { %386 = vmatpush.msra.mxu1 %v186_v25  ;;  %698 = vmatmul.msk.f32.vlgmr.msra.gmra.mxu0 %vm209_vm0, %v161_v23 }
  0x26   : > { %781 = vmatpush.msrb.mxu3 %v204_v7  ;;  %722 = vmatmul.msk.f32.vlgmr.msra.gmra.mxu1 %vm209_vm0, %v161_v23 }
  0x28   : > { %782 = vmatpush.msrb.mxu3 %v201_v10 }
  0x2a   : > { %717 = vmatmul.msk.f32.gmra.mxu3 %vm209_vm0, %v947_v26  ;;  %747 = vmatmul.msk.f32.gmra.mxu2 %vm209_vm0, %v162_v27 }
  0x2b   : > { %783 = vmatpush.msrb.mxu3 %v198_v13 }
  0x2d   : > { %699 = vmatmul.msk.f32.gmra.mxu0 %vm209_vm0, %v162_v27  ;;  %784 = vmatpush.msrb.mxu3 %v195_v16 }
  0x2e   : > { %723 = vmatmul.msk.f32.gmra.mxu1 %vm209_vm0, %v162_v27 }
  0x2f   : > { %785 = vmatpush.msrb.mxu3 %v192_v19 }
  0x31   : > { %786 = vmatpush.msrb.mxu3 %v189_v24 }
  0x32   : > { %718 = vmatmul.msk.f32.gmra.mxu3 %vm209_vm0, %v954_v28  ;;  %748 = vmatmul.msk.f32.gmra.mxu2 %vm209_vm0, %v163_v29 }
  0x33   : > { %787 = vmatpush.msrb.mxu3 %v186_v25 }
  0x35   : > { %788 = vmatpush.msra.mxu3 %v900_v1  ;;  %700 = vmatmul.msk.f32.gmra.mxu0 %vm209_vm0, %v163_v29 }
  0x36   : > { %724 = vmatmul.msk.f32.gmra.mxu1 %vm209_vm0, %v163_v29 }
  0x37   : > { %789 = vmatpush.msra.mxu3 %v905_v3 }
  0x39   : > { %790 = vmatpush.msra.mxu3 %v909_v5 }
  0x3a   : > { %719 = vmatmul.msk.f32.gmra.mxu3 %vm209_vm0, %v963_v30  ;;  %749 = vmatmul.msk.f32.gmra.mxu2 %vm209_vm0, %v164_v31 }
  0x3b   : > { %791 = vmatpush.msra.mxu3 %v916_v9 }
  0x3d   : > { %701 = vmatmul.msk.f32.gmra.mxu0 %vm209_vm0, %v164_v31  ;;  %792 = vmatpush.msra.mxu3 %v922_v12 }
  0x3e   : > { %725 = vmatmul.msk.f32.gmra.mxu1 %vm209_vm0, %v164_v31 }
  0x3f   : > { %793 = vmatpush.msra.mxu3 %v928_v15 }
  0x41   : > { %794 = vmatpush.msra.mxu3 %v190_v18 }
  0x42   : > { %720 = vmatmul.msk.f32.gmra.mxu3 %vm209_vm0, %v973_v32  ;;  %750 = vmatmul.msk.f32.gmra.mxu2 %vm209_vm0, %v165_v33 }
  0x43   : > { %795 = vmatpush.msra.mxu3 %v187_v21 }
  0x45   : > { %702 = vmatmul.msk.f32.gmra.mxu0 %vm209_vm0, %v165_v33 }
  0x46   : > { %726 = vmatmul.msk.f32.gmra.mxu1 %vm209_vm0, %v165_v33 }
  0x4a   : > { %721 = vmatmul.msk.f32.gmra.mxu3 %vm209_vm0, %v981_v34  ;;  %751 = vmatmul.msk.f32.gmra.mxu2 %vm209_vm0, %v166_v35 }
  0x4d   : > { %703 = vmatmul.msk.f32.gmra.mxu0 %vm209_vm0, %v166_v35 }
  0x4e   : > { %727 = vmatmul.msk.f32.gmra.mxu1 %vm209_vm0, %v166_v35 }
  0x52   : > { %740 = vmatmul.msk.f32.vlgmr.msrb.gmra.mxu3 %vm209_vm0, %v938_v22  ;;  %752 = vmatmul.msk.f32.gmra.mxu2 %vm209_vm0, %v167_v36 }
  0x55   : > { %704 = vmatmul.msk.f32.gmra.mxu0 %vm209_vm0, %v167_v36 }
  0x56   : > { %728 = vmatmul.msk.f32.gmra.mxu1 %vm209_vm0, %v167_v36 }
  0x5a   : > { %741 = vmatmul.msk.f32.gmra.mxu3 %vm209_vm0, %v947_v26  ;;  %753 = vmatmul.msk.f32.gmra.mxu2 %vm209_vm0, %v168_v37 }
  0x5d   : > { %705 = vmatmul.msk.f32.gmra.mxu0 %vm209_vm0, %v168_v37 }
  0x5e   : > { %729 = vmatmul.msk.f32.gmra.mxu1 %vm209_vm0, %v168_v37 }
  0x62   : > { %742 = vmatmul.msk.f32.gmra.mxu3 %vm209_vm0, %v954_v28  ;;  %754 = vmatmul.msk.f32.gmra.mxu2 %vm209_vm0, %v169_v38 }
  0x65   : > { %706 = vmatmul.msk.f32.gmra.mxu0 %vm209_vm0, %v169_v38 }
  0x66   : > { %730 = vmatmul.msk.f32.gmra.mxu1 %vm209_vm0, %v169_v38 }
  0x6a   : > { %743 = vmatmul.msk.f32.gmra.mxu3 %vm209_vm0, %v963_v30  ;;  %755 = vmatmul.msk.f32.gmra.mxu2 %vm209_vm0, %v170_v39 }
  0x6d   : > { %707 = vmatmul.msk.f32.gmra.mxu0 %vm209_vm0, %v170_v39 }
  0x6e   : > { %731 = vmatmul.msk.f32.gmra.mxu1 %vm209_vm0, %v170_v39 }
  0x72   : > { %744 = vmatmul.msk.f32.gmra.mxu3 %vm209_vm0, %v973_v32  ;;  %756 = vmatmul.msk.f32.gmra.mxu2 %vm209_vm0, %v171_v40 }
  0x75   : > { %708 = vmatmul.msk.f32.gmra.mxu0 %vm209_vm0, %v171_v40 }
  0x76   : > { %732 = vmatmul.msk.f32.gmra.mxu1 %vm209_vm0, %v171_v40 }
  0x7a   : > { %745 = vmatmul.msk.f32.gmra.mxu3 %vm209_vm0, %v981_v34  ;;  %757 = vmatmul.msk.f32.gmra.mxu2 %vm209_vm0, %v172_v41 }
  0x7d   : > { %709 = vmatmul.msk.f32.gmra.mxu0 %vm209_vm0, %v172_v41 }
  0x7e   : > { %733 = vmatmul.msk.f32.gmra.mxu1 %vm209_vm0, %v172_v41 }
  0x82   : > { %758 = vmatmul.msk.f32.gmra.mxu2 %vm209_vm0, %v173_v42  ;;  %764 = vmatmul.msk.f32.vlgmr.msra.gmra.mxu3 %vm209_vm0, %v938_v22 }
  0x85   : > { %710 = vmatmul.msk.f32.gmra.mxu0 %vm209_vm0, %v173_v42 }
  0x86   : > { %734 = vmatmul.msk.f32.gmra.mxu1 %vm209_vm0, %v173_v42 }
  0x8a   : > { %759 = vmatmul.msk.f32.gmra.mxu2 %vm209_vm0, %v174_v43  ;;  %765 = vmatmul.msk.f32.gmra.mxu3 %vm209_vm0, %v947_v26 }
  0x8d   : > { %711 = vmatmul.msk.f32.gmra.mxu0 %vm209_vm0, %v174_v43 }
  0x8e   : > { %735 = vmatmul.msk.f32.gmra.mxu1 %vm209_vm0, %v174_v43 }
  0x92   : > { %760 = vmatmul.msk.f32.gmra.mxu2 %vm209_vm0, %v175_v44  ;;  %766 = vmatmul.msk.f32.gmra.mxu3 %vm209_vm0, %v954_v28 }
  0x95   : > { %712 = vmatmul.msk.f32.gmra.mxu0 %vm209_vm0, %v175_v44 }
  0x96   : > { %736 = vmatmul.msk.f32.gmra.mxu1 %vm209_vm0, %v175_v44 }
  0x9a   : > { %761 = vmatmul.msk.f32.gmra.mxu2 %vm209_vm0, %v176_v45  ;;  %767 = vmatmul.msk.f32.gmra.mxu3 %vm209_vm0, %v963_v30 }
  0x9d   : > { %713 = vmatmul.msk.f32.gmra.mxu0 %vm209_vm0, %v176_v45 }
  0x9e   : > { %737 = vmatmul.msk.f32.gmra.mxu1 %vm209_vm0, %v176_v45 }
  0xa2   : > { %762 = vmatmul.msk.f32.gmra.mxu2 %vm209_vm0, %v177_v46  ;;  %768 = vmatmul.msk.f32.gmra.mxu3 %vm209_vm0, %v973_v32  ;;  %v299_v47 = vpop.f32.mrf.mxu0 }
  0xa3   : > { %549 = vst [vmem:[%s1042_s25] sm:$0xff] %v299_v47  ;;  %v388_v48 = vpop.f32.mrf.mxu1 }
  0xa4   : > { %550 = vst [vmem:[%s1042_s25 + $0x8] sm:$0xff] %v388_v48 }
  0xa5   : > { %v353_v49 = vpop.f32.mrf.mxu3  ;;  %v477_v50 = vpop.f32.mrf.mxu2  ;;  %714 = vmatmul.msk.f32.gmra.mxu0 %vm209_vm0, %v177_v46 }
  0xa6   : > { %604 = vst [vmem:[%s1042_s25 + $0x1b0] sm:$0xff] %v353_v49  ;;  %738 = vmatmul.msk.f32.gmra.mxu1 %vm209_vm0, %v177_v46 }
  0xa7   : > { %552 = vst.msk [vmem:[%s1042_s25 + $0x10] sm:$0xff] %vm551_vm1, %v477_v50 }
  0xaa   : > { %763 = vmatmul.msk.f32.gmra.mxu2 %vm209_vm0, %v178_v51  ;;  %769 = vmatmul.msk.f32.gmra.mxu3 %vm209_vm0, %v981_v34  ;;  %v302_v52 = vpop.f32.mrf.mxu0 }
  0xab   : > { %553 = vst [vmem:[%s1042_s25 + $0x18] sm:$0xff] %v302_v52  ;;  %v391_v53 = vpop.f32.mrf.mxu1 }
  0xac   : > { %554 = vst [vmem:[%s1042_s25 + $0x20] sm:$0xff] %v391_v53 }
  0xad   : > { %v356_v54 = vpop.f32.mrf.mxu3  ;;  %v480_v55 = vpop.f32.mrf.mxu2  ;;  %715 = vmatmul.msk.f32.gmra.mxu0 %vm209_vm0, %v178_v51 }
  0xae   : > { %607 = vst [vmem:[%s1042_s25 + $0x1c8] sm:$0xff] %v356_v54  ;;  %739 = vmatmul.msk.f32.gmra.mxu1 %vm209_vm0, %v178_v51 }
  0xaf   : > { %555 = vst.msk [vmem:[%s1042_s25 + $0x28] sm:$0xff] %vm551_vm1, %v480_v55 }
  0xb2   : > { %v305_v56 = vpop.f32.mrf.mxu0 }
  0xb3   : > { %556 = vst [vmem:[%s1042_s25 + $0x30] sm:$0xff] %v305_v56  ;;  %v394_v57 = vpop.f32.mrf.mxu1 }
  0xb4   : > { %557 = vst [vmem:[%s1042_s25 + $0x38] sm:$0xff] %v394_v57 }
  0xb5   : > { %v359_v58 = vpop.f32.mrf.mxu3  ;;  %v483_v59 = vpop.f32.mrf.mxu2 }
  0xb6   : > { %610 = vst [vmem:[%s1042_s25 + $0x1e0] sm:$0xff] %v359_v58 }
  0xb7   : > { %558 = vst.msk [vmem:[%s1042_s25 + $0x40] sm:$0xff] %vm551_vm1, %v483_v59 }
  0xba   : > { %v308_v60 = vpop.f32.mrf.mxu0 }
  0xbb   : > { %559 = vst [vmem:[%s1042_s25 + $0x48] sm:$0xff] %v308_v60  ;;  %v397_v61 = vpop.f32.mrf.mxu1 }
  0xbc   : > { %560 = vst [vmem:[%s1042_s25 + $0x50] sm:$0xff] %v397_v61 }
  0xbd   : > { %v362_v62 = vpop.f32.mrf.mxu3  ;;  %v486_v63 = vpop.f32.mrf.mxu2 }
  0xbe   : > { %613 = vst [vmem:[%s1042_s25 + $0x1f8] sm:$0xff] %v362_v62 }
  0xbf   : > { %561 = vst.msk [vmem:[%s1042_s25 + $0x58] sm:$0xff] %vm551_vm1, %v486_v63 }
  0xc2   : > { %v311_v0 = vpop.f32.mrf.mxu0 }
  0xc3   : > { %562 = vst [vmem:[%s1042_s25 + $0x60] sm:$0xff] %v311_v0  ;;  %v400_v1 = vpop.f32.mrf.mxu1 }
  0xc4   : > { %563 = vst [vmem:[%s1042_s25 + $0x68] sm:$0xff] %v400_v1 }
  0xc5   : > { %v365_v2 = vpop.f32.mrf.mxu3  ;;  %v489_v3 = vpop.f32.mrf.mxu2 }
  0xc6   : > { %616 = vst [vmem:[%s1042_s25 + $0x210] sm:$0xff] %v365_v2 }
  0xc7   : > { %564 = vst.msk [vmem:[%s1042_s25 + $0x70] sm:$0xff] %vm551_vm1, %v489_v3 }
  0xca   : > { %v314_v4 = vpop.f32.mrf.mxu0 }
  0xcb   : > { %565 = vst [vmem:[%s1042_s25 + $0x78] sm:$0xff] %v314_v4  ;;  %v403_v5 = vpop.f32.mrf.mxu1 }
  0xcc   : > { %566 = vst [vmem:[%s1042_s25 + $0x80] sm:$0xff] %v403_v5 }
  0xcd   : > { %v368_v6 = vpop.f32.mrf.mxu3  ;;  %v492_v7 = vpop.f32.mrf.mxu2 }
  0xce   : > { %619 = vst [vmem:[%s1042_s25 + $0x228] sm:$0xff] %v368_v6 }
  0xcf   : > { %567 = vst.msk [vmem:[%s1042_s25 + $0x88] sm:$0xff] %vm551_vm1, %v492_v7 }
  0xd2   : > { %v317_v8 = vpop.f32.mrf.mxu0 }
  0xd3   : > { %568 = vst [vmem:[%s1042_s25 + $0x90] sm:$0xff] %v317_v8  ;;  %v406_v9 = vpop.f32.mrf.mxu1 }
  0xd4   : > { %569 = vst [vmem:[%s1042_s25 + $0x98] sm:$0xff] %v406_v9 }
  0xd5   : > { %v442_v10 = vpop.f32.mrf.mxu3  ;;  %v495_v11 = vpop.f32.mrf.mxu2 }
  0xd6   : > { %605 = vst [vmem:[%s1042_s25 + $0x1b8] sm:$0xff] %v442_v10 }
  0xd7   : > { %570 = vst.msk [vmem:[%s1042_s25 + $0xa0] sm:$0xff] %vm551_vm1, %v495_v11 }
  0xda   : > { %v320_v12 = vpop.f32.mrf.mxu0 }
  0xdb   : > { %571 = vst [vmem:[%s1042_s25 + $0xa8] sm:$0xff] %v320_v12  ;;  %v409_v13 = vpop.f32.mrf.mxu1 }
  0xdc   : > { %572 = vst [vmem:[%s1042_s25 + $0xb0] sm:$0xff] %v409_v13 }
  0xdd   : > { %v445_v14 = vpop.f32.mrf.mxu3  ;;  %v498_v15 = vpop.f32.mrf.mxu2 }
  0xde   : > { %608 = vst [vmem:[%s1042_s25 + $0x1d0] sm:$0xff] %v445_v14 }
  0xdf   : > { %573 = vst.msk [vmem:[%s1042_s25 + $0xb8] sm:$0xff] %vm551_vm1, %v498_v15 }
  0xe2   : > { %v323_v16 = vpop.f32.mrf.mxu0 }
  0xe3   : > { %574 = vst [vmem:[%s1042_s25 + $0xc0] sm:$0xff] %v323_v16  ;;  %v412_v17 = vpop.f32.mrf.mxu1 }
  0xe4   : > { %575 = vst [vmem:[%s1042_s25 + $0xc8] sm:$0xff] %v412_v17 }
  0xe5   : > { %v448_v18 = vpop.f32.mrf.mxu3  ;;  %v501_v19 = vpop.f32.mrf.mxu2 }
  0xe6   : > { %611 = vst [vmem:[%s1042_s25 + $0x1e8] sm:$0xff] %v448_v18 }
  0xe7   : > { %576 = vst.msk [vmem:[%s1042_s25 + $0xd0] sm:$0xff] %vm551_vm1, %v501_v19 }
  0xea   : > { %v326_v20 = vpop.f32.mrf.mxu0 }
  0xeb   : > { %577 = vst [vmem:[%s1042_s25 + $0xd8] sm:$0xff] %v326_v20  ;;  %v415_v21 = vpop.f32.mrf.mxu1 }
  0xec   : > { %578 = vst [vmem:[%s1042_s25 + $0xe0] sm:$0xff] %v415_v21 }
  0xed   : > { %v451_v22 = vpop.f32.mrf.mxu3  ;;  %v504_v23 = vpop.f32.mrf.mxu2 }
  0xee   : > { %614 = vst [vmem:[%s1042_s25 + $0x200] sm:$0xff] %v451_v22 }
  0xef   : > { %579 = vst.msk [vmem:[%s1042_s25 + $0xe8] sm:$0xff] %vm551_vm1, %v504_v23 }
  0xf2   : > { %v329_v24 = vpop.f32.mrf.mxu0 }
  0xf3   : > { %580 = vst [vmem:[%s1042_s25 + $0xf0] sm:$0xff] %v329_v24  ;;  %v418_v25 = vpop.f32.mrf.mxu1 }
  0xf4   : > { %581 = vst [vmem:[%s1042_s25 + $0xf8] sm:$0xff] %v418_v25 }
  0xf5   : > { %v454_v26 = vpop.f32.mrf.mxu3  ;;  %v507_v27 = vpop.f32.mrf.mxu2 }
  0xf6   : > { %617 = vst [vmem:[%s1042_s25 + $0x218] sm:$0xff] %v454_v26 }
  0xf7   : > { %582 = vst.msk [vmem:[%s1042_s25 + $0x100] sm:$0xff] %vm551_vm1, %v507_v27 }
  0xfa   : > { %v332_v28 = vpop.f32.mrf.mxu0 }
  0xfb   : > { %583 = vst [vmem:[%s1042_s25 + $0x108] sm:$0xff] %v332_v28  ;;  %v421_v29 = vpop.f32.mrf.mxu1 }
  0xfc   : > { %584 = vst [vmem:[%s1042_s25 + $0x110] sm:$0xff] %v421_v29 }
  0xfd   : > { %v457_v30 = vpop.f32.mrf.mxu3  ;;  %v510_v31 = vpop.f32.mrf.mxu2 }
  0xfe   : > { %620 = vst [vmem:[%s1042_s25 + $0x230] sm:$0xff] %v457_v30 }
  0xff   : > { %585 = vst.msk [vmem:[%s1042_s25 + $0x118] sm:$0xff] %vm551_vm1, %v510_v31 }
 0x102   : > { %v335_v32 = vpop.f32.mrf.mxu0 }
 0x103   : > { %586 = vst [vmem:[%s1042_s25 + $0x120] sm:$0xff] %v335_v32  ;;  %v424_v33 = vpop.f32.mrf.mxu1 }
 0x104   : > { %587 = vst [vmem:[%s1042_s25 + $0x128] sm:$0xff] %v424_v33 }
 0x105   : > { %v513_v34 = vpop.f32.mrf.mxu2  ;;  %v531_v35 = vpop.f32.mrf.mxu3 }
 0x106   : > { %588 = vst.msk [vmem:[%s1042_s25 + $0x130] sm:$0xff] %vm551_vm1, %v513_v34 }
 0x107   : > { %606 = vst.msk [vmem:[%s1042_s25 + $0x1c0] sm:$0xff] %vm551_vm1, %v531_v35 }
 0x10a   : > { %v338_v36 = vpop.f32.mrf.mxu0 }
 0x10b   : > { %589 = vst [vmem:[%s1042_s25 + $0x138] sm:$0xff] %v338_v36  ;;  %v427_v37 = vpop.f32.mrf.mxu1 }
 0x10c   : > { %590 = vst [vmem:[%s1042_s25 + $0x140] sm:$0xff] %v427_v37 }
 0x10d   : > { %v516_v38 = vpop.f32.mrf.mxu2  ;;  %v534_v39 = vpop.f32.mrf.mxu3 }
 0x10e   : > { %591 = vst.msk [vmem:[%s1042_s25 + $0x148] sm:$0xff] %vm551_vm1, %v516_v38 }
 0x10f   : > { %609 = vst.msk [vmem:[%s1042_s25 + $0x1d8] sm:$0xff] %vm551_vm1, %v534_v39 }
 0x112   : > { %v341_v40 = vpop.f32.mrf.mxu0 }
 0x113   : > { %592 = vst [vmem:[%s1042_s25 + $0x150] sm:$0xff] %v341_v40  ;;  %v430_v41 = vpop.f32.mrf.mxu1 }
 0x114   : > { %593 = vst [vmem:[%s1042_s25 + $0x158] sm:$0xff] %v430_v41 }
 0x115   : > { %v519_v42 = vpop.f32.mrf.mxu2  ;;  %v537_v43 = vpop.f32.mrf.mxu3 }
 0x116   : > { %594 = vst.msk [vmem:[%s1042_s25 + $0x160] sm:$0xff] %vm551_vm1, %v519_v42 }
 0x117   : > { %612 = vst.msk [vmem:[%s1042_s25 + $0x1f0] sm:$0xff] %vm551_vm1, %v537_v43 }
 0x11a   : > { %v344_v44 = vpop.f32.mrf.mxu0 }
 0x11b   : > { %595 = vst [vmem:[%s1042_s25 + $0x168] sm:$0xff] %v344_v44  ;;  %v433_v45 = vpop.f32.mrf.mxu1 }
 0x11c   : > { %596 = vst [vmem:[%s1042_s25 + $0x170] sm:$0xff] %v433_v45 }
 0x11d   : > { %v522_v46 = vpop.f32.mrf.mxu2  ;;  %v540_v47 = vpop.f32.mrf.mxu3 }
 0x11e   : > { %597 = vst.msk [vmem:[%s1042_s25 + $0x178] sm:$0xff] %vm551_vm1, %v522_v46 }
 0x11f   : > { %615 = vst.msk [vmem:[%s1042_s25 + $0x208] sm:$0xff] %vm551_vm1, %v540_v47 }
 0x122   : > { %v347_v48 = vpop.f32.mrf.mxu0 }
 0x123   : > { %598 = vst [vmem:[%s1042_s25 + $0x180] sm:$0xff] %v347_v48  ;;  %v436_v49 = vpop.f32.mrf.mxu1 }
 0x124   : > { %599 = vst [vmem:[%s1042_s25 + $0x188] sm:$0xff] %v436_v49 }
 0x125   : > { %v525_v50 = vpop.f32.mrf.mxu2  ;;  %v543_v51 = vpop.f32.mrf.mxu3 }
 0x126   : > { %600 = vst.msk [vmem:[%s1042_s25 + $0x190] sm:$0xff] %vm551_vm1, %v525_v50 }
 0x127   : > { %618 = vst.msk [vmem:[%s1042_s25 + $0x220] sm:$0xff] %vm551_vm1, %v543_v51 }
 0x12a   : > { %v350_v52 = vpop.f32.mrf.mxu0 }
 0x12b   : > { %601 = vst [vmem:[%s1042_s25 + $0x198] sm:$0xff] %v350_v52  ;;  %v439_v53 = vpop.f32.mrf.mxu1 }
 0x12c   : > { %602 = vst [vmem:[%s1042_s25 + $0x1a0] sm:$0xff] %v439_v53 }
 0x12d   : > { %v528_v54 = vpop.f32.mrf.mxu2  ;;  %v546_v55 = vpop.f32.mrf.mxu3 }
 0x12e   : > { %603 = vst.msk [vmem:[%s1042_s25 + $0x1a8] sm:$0xff] %vm551_vm1, %v528_v54 }
 0x12f   : > { %621 = vst.msk [vmem:[%s1042_s25 + $0x238] sm:$0xff] %vm551_vm1, %v546_v55 }
 0x130 PF: > { %s13_s9 = sadd.s32 1, %s859_s9  }
 0x131   : > { %p10_p7 = scmp.ge.s32.totalorder %s13_s9, 4  }
 0x133   :  { %12 = sbr.rel (!%p10_p7) target bundleno = 1 (0x1), region = 63 }
 0x138   :  { %643 = vsyncpa [#allocation3], 1 }
 0x139   :  { %645 = vsyncpa [#allocation3 + $0x1], 1 }

// kernel: attention_forward.3
= control target key start
LH: loop header
LB: loop body
LE: loop exit
PB: predicated region body
PF: predicated region fallthrough
CT: control target
= control target key end

     0   :  { %s1747_s12 = smov 0   ;;  %s1749_s13 = smov 0   ;;  %s3032_s0 = inlined_call_operand.vmem [shape: f32[2,4,1,2704], index: 0, kind: input, shape index: {}]   ;;  %s3033_s1 = inlined_call_operand.vmem [shape: f32[2,4,50,2704], index: 1, kind: input, shape index: {}]   ;;  %s3034_s2 = inlined_call_operand.vmem [shape: f32[2,4,50,2704], index: 2, kind: input, shape index: {}]   ;;  %s3035_s3 = inlined_call_operand.vmem [shape: f32[2,4,1,2704], index: 3, kind: output, shape index: {}]  }
   0x1   :  { %s1751_s14 = smov 0   ;;  %s1753_s15 = smov 0  }
   0x2   :  { %s1755_s16 = smov 0  }
   0x3 LB: > { %s22_s17 = sadd.s32 1, %s1717_s14  ;;  %s25_s18 = sadd.s32 1, %s1721_s15  ;;  %s1725_s16 = sphi %s1755_s16, %s13_s16   ;;  %s1721_s15 = sphi %s1753_s15, %s3169_s15   ;;  %s1717_s14 = sphi %s1751_s14, %s3168_s14   ;;  %s1713_s13 = sphi %s1749_s13, %s3167_s13   ;;  %s1709_s12 = sphi %s1747_s12, %s3166_s12  }
   0x4   : > { %p23_p0 = scmp.ge.s32.totalorder %s22_s17, 4  ;;  %p1638_p1 = scmp.ge.s32.totalorder %s1725_s16, 1 }
   0x5   : > { %p188_p2 = scmp.lt.s32.totalorder %s1725_s16, 9 }
   0x6   : > { %s3171_s17 = smov (%p23_p0, %s22_s17), 0  ;;  %s3173_s18 = smov (!%p23_p0, %s25_s18), %s1721_s15 }
   0x7   : > { %p189_p3 = pnand %p1638_p1, %p188_p2  ;;  %p27_p4 = scmp.ge.s32.totalorder %s3173_s18, 2 }
   0x9   : > { %s3175_s18 = smov (%p27_p4, %s3173_s18), 0  ;;  %192 = sbr.rel (%p189_p3) target bundleno = 352 (0x160), region = 32 }
   0xe   : > { %p236_p5 = scmp.lt.s32.totalorder %s1713_s13, 1  ;;  %p238_p6 = scmp.lt.s32.totalorder %s1709_s12, 3  ;;  %vm648_vm0 = vcmask 130048   ;;  %vm773_vm1 = vcmask 1041408   ;;  %vm815_vm2 = vcmask 123904   ;;  %vm1468_vm3 = vcmask 1040384  }
   0xf   : > { %vm1470_vm4 = vcmask 1042434   ;;  %vm1473_vm5 = vcmask 1044484   ;;  %vm1475_vm6 = vcmask 1046534   ;;  %vm1477_vm7 = vcmask 1045508  }
  0x10   : > { %s3177_s13 = smov (!%p236_p5, %s1713_s13), 1  ;;  %s3179_s12 = smov (!%p238_p6, %s1709_s12), 3  ;;  %vm1479_vm8 = vcmask 1043456   ;;  %vm1490_vm9 = vcmask 1043459   ;;  %vm1492_vm10 = vcmask 1044483   ;;  %vm1494_vm11 = vcmask 1042432  }
  0x11   : > { %s1644_s19 = smul.u32 88, %s3177_s13 }
  0x12   : > { %s1643_s20 = smul.u32 22, %s3179_s12 }
  0x13   : > { %s1645_s21 = smul.u32 154, %s3179_s12 }
  0x14   : > { %s1777_s22 = sadd.s32 %s1644_s19, %s1643_s20  ;;  %s1646_s23 = smul.u32 616, %s3177_s13 }
  0x15   : > { %s1783_s26 = scalar_lea.vmem %s3032_s0, %s1777_s22  ;;  %s269_s10 = scalar_lea.vmem %s3035_s3, %s1777_s22 }
  0x16   : > { %s1785_s27 = sadd.s32 %s1646_s23, %s1645_s21  ;;  %v270_v0 = vld [vmem:[%s1783_s26] sm:$0xff]  ;;  %v271_v15 = vld [vmem:[%s1783_s26 + $0x8] sm:$0xff]  ;;  %v272_v30 = vld [vmem:[%s1783_s26 + $0x10] sm:$0x3f] }
  0x17   : > { %s1639_s28 = sshll.u32 %s1785_s27, 3  ;;  %v1796_v1 = vperm.slane %v270_v0, 0  ;;  %v1798_v2 = vperm.slane %v270_v0, 1  ;;  %v1802_v5 = vperm.slane %v270_v0, 2  ;;  %v1805_v7 = vperm.slane %v270_v0, 3 }
  0x18   : > { %s1794_s4 = scalar_lea.vmem %s3033_s1, %s1639_s28  ;;  %v1810_v11 = vperm.slane %v270_v0, 4  ;;  %v1817_v17 = vperm.slane %v270_v0, 5  ;;  %v1822_v22 = vperm.slane %v270_v0, 6  ;;  %v1826_v25 = vperm.slane %v270_v0, 7  ;;  %s2243_s7 = scalar_lea.vmem %s3034_s2, %s1639_s28 }
  0x19   : > { %v273_v3 = vld [vmem:[%s1794_s4] sm:$0xff]  ;;  %v274_v4 = vld [vmem:[%s1794_s4 + $0x8] sm:$0xff]  ;;  %v275_v6 = vld [vmem:[%s1794_s4 + $0x10] sm:$0xff]  ;;  %v1828_v26 = vperm.slane %v271_v15, 0  ;;  %v1834_v32 = vperm.slane %v271_v15, 1  ;;  %v1836_v33 = vperm.slane %v271_v15, 2 }
  0x1a   : > { %v474_v8 = vmul.f32 %v1796_v1, %v273_v3  ;;  %v475_v9 = vmul.f32 %v1798_v2, %v274_v4  ;;  %v276_v10 = vld [vmem:[%s1794_s4 + $0x18] sm:$0xff]  ;;  %v476_v12 = vmul.f32 %v1802_v5, %v275_v6  ;;  %v317_v13 = vld [vmem:[%s1794_s4 + $0x160] sm:$0xff]  ;;  %v318_v14 = vld [vmem:[%s1794_s4 + $0x168] sm:$0xff]  ;;  %v1838_v34 = vperm.slane %v271_v15, 3 }
  0x1b   : > { %v277_v16 = vld [vmem:[%s1794_s4 + $0x20] sm:$0xff]  ;;  %v477_v18 = vmul.f32 %v1805_v7, %v276_v10  ;;  %v319_v20 = vld [vmem:[%s1794_s4 + $0x170] sm:$0xff]  ;;  %v278_v21 = vld [vmem:[%s1794_s4 + $0x28] sm:$0xff]  ;;  %v518_v23 = vmul.f32 %v1796_v1, %v317_v13  ;;  %v519_v24 = vmul.f32 %v1798_v2, %v318_v14  ;;  %v1841_v36 = vperm.slane %v271_v15, 4 }
  0x1c   : > { %v628_v19 = vadd.f32 %v475_v9, %v474_v8  ;;  %v478_v27 = vmul.f32 %v1810_v11, %v277_v16  ;;  %v320_v29 = vld [vmem:[%s1794_s4 + $0x178] sm:$0xff]  ;;  %v279_v31 = vld [vmem:[%s1794_s4 + $0x30] sm:$0xff]  ;;  %v520_v35 = vmul.f32 %v1802_v5, %v319_v20  ;;  %v1843_v37 = vperm.slane %v271_v15, 5  ;;  %v321_v40 = vld [vmem:[%s1794_s4 + $0x180] sm:$0xff] }
  0x1d   : > { %v479_v38 = vmul.f32 %v1817_v17, %v278_v21  ;;  %v280_v41 = vld [vmem:[%s1794_s4 + $0x38] sm:$0xff]  ;;  %v1848_v42 = vperm.slane %v271_v15, 6  ;;  %v1850_v43 = vperm.slane %v271_v15, 7  ;;  %v521_v44 = vmul.f32 %v1805_v7, %v320_v29  ;;  %v281_v46 = vld [vmem:[%s1794_s4 + $0x40] sm:$0xff]  ;;  %v282_v47 = vld [vmem:[%s1794_s4 + $0x48] sm:$0xff] }
  0x1e   : > { %v629_v28 = vadd.f32 %v628_v19, %v476_v12  ;;  %v677_v45 = vadd.f32 %v519_v24, %v518_v23  ;;  %v1855_v48 = vperm.slane %v272_v30, 0  ;;  %v1857_v49 = vperm.slane %v272_v30, 1  ;;  %v322_v52 = vld [vmem:[%s1794_s4 + $0x188] sm:$0xff]  ;;  %v283_v53 = vld [vmem:[%s1794_s4 + $0x50] sm:$0xff]  ;;  %v284_v54 = vld [vmem:[%s1794_s4 + $0x58] sm:$0xff] }
  0x1f   : > { %v480_v50 = vmul.f32 %v1822_v22, %v279_v31  ;;  %v285_v55 = vld [vmem:[%s1794_s4 + $0x60] sm:$0xff]  ;;  %v1864_v56 = vperm.slane %v272_v30, 2  ;;  %v1866_v57 = vperm.slane %v272_v30, 3  ;;  %v522_v58 = vmul.f32 %v1810_v11, %v321_v40  ;;  %v323_v0 = vld [vmem:[%s1794_s4 + $0x190] sm:$0xff]  ;;  %v362_v4 = vld [vmem:[%s1794_s4 + $0x2c8] sm:$0xff] }
  0x20   : > { %v630_v39 = vadd.f32 %v629_v28, %v477_v18  ;;  %v678_v59 = vadd.f32 %v677_v45, %v520_v35  ;;  %v1869_v60 = vperm.slane %v272_v30, 4  ;;  %v1871_v61 = vperm.slane %v272_v30, 5  ;;  %v361_v3 = vld [vmem:[%s1794_s4 + $0x2c0] sm:$0xff]  ;;  %v286_v6 = vld [vmem:[%s1794_s4 + $0x68] sm:$0xff]  ;;  %v287_v8 = vld [vmem:[%s1794_s4 + $0x70] sm:$0xff] }
  0x21   : > { %v481_v62 = vmul.f32 %v1826_v25, %v280_v41  ;;  %v288_v9 = vld [vmem:[%s1794_s4 + $0x78] sm:$0xff]  ;;  %v482_v10 = vmul.f32 %v1828_v26, %v281_v46  ;;  %v483_v12 = vmul.f32 %v1834_v32, %v282_v47  ;;  %v523_v13 = vmul.f32 %v1817_v17, %v322_v52  ;;  %v289_v15 = vld [vmem:[%s1794_s4 + $0x80] sm:$0xff]  ;;  %v363_v23 = vld [vmem:[%s1794_s4 + $0x2d0] sm:$0xff] }
  0x22   : > { %v631_v51 = vadd.f32 %v630_v39, %v478_v27  ;;  %v679_v14 = vadd.f32 %v678_v59, %v521_v44  ;;  %v484_v16 = vmul.f32 %v1836_v33, %v283_v53  ;;  %v1886_v18 = vmul.f32 %v1838_v34, %v284_v54  ;;  %v324_v21 = vld [vmem:[%s1794_s4 + $0x198] sm:$0xff]  ;;  %v290_v24 = vld [vmem:[%s1794_s4 + $0x88] sm:$0xff]  ;;  %v291_v27 = vld [vmem:[%s1794_s4 + $0x90] sm:$0xff] }
  0x23   : > { %v1889_v19 = vmul.f32 %v1841_v36, %v285_v55  ;;  %v292_v28 = vld [vmem:[%s1794_s4 + $0x98] sm:$0xff]  ;;  %v524_v29 = vmul.f32 %v1822_v22, %v323_v0  ;;  %v562_v31 = vmul.f32 %v1796_v1, %v361_v3  ;;  %v563_v35 = vmul.f32 %v1798_v2, %v362_v4  ;;  %v325_v44 = vld [vmem:[%s1794_s4 + $0x1a0] sm:$0xff]  ;;  %v294_v47 = vld [vmem:[%s1794_s4 + $0xa8] sm:$0xff] }
  0x24   : > { %v632_v63 = vadd.f32 %v631_v51, %v479_v38  ;;  %v680_v30 = vadd.f32 %v679_v14, %v522_v58  ;;  %v1900_v38 = vmul.f32 %v1843_v37, %v286_v6  ;;  %v1903_v39 = vmul.f32 %v1848_v42, %v287_v8  ;;  %v364_v45 = vld [vmem:[%s1794_s4 + $0x2d8] sm:$0xff]  ;;  %v293_v46 = vld [vmem:[%s1794_s4 + $0xa0] sm:$0xff]  ;;  %v326_v51 = vld [vmem:[%s1794_s4 + $0x1a8] sm:$0xff] }
  0x25   : > { %v1906_v40 = vmul.f32 %v1850_v43, %v288_v9  ;;  %v525_v52 = vmul.f32 %v1826_v25, %v324_v21  ;;  %v564_v54 = vmul.f32 %v1802_v5, %v363_v23  ;;  %v1919_v55 = vmul.f32 %v1857_v49, %v290_v24  ;;  %v365_v0 = vld [vmem:[%s1794_s4 + $0x2e0] sm:$0xff]  ;;  %v328_v3 = vld [vmem:[%s1794_s4 + $0x1b8] sm:$0xff]  ;;  %v330_v6 = vld [vmem:[%s1794_s4 + $0x1c8] sm:$0xff] }
  0x26   : > { %v633_v20 = vadd.f32 %v632_v63, %v480_v50  ;;  %v1913_v50 = vmul.f32 %v1855_v48, %v289_v15  ;;  %v681_v53 = vadd.f32 %v680_v30, %v523_v13  ;;  %v1922_v58 = vmul.f32 %v1864_v56, %v291_v27  ;;  %v327_v63 = vld [vmem:[%s1794_s4 + $0x1b0] sm:$0xff]  ;;  %v329_v4 = vld [vmem:[%s1794_s4 + $0x1c0] sm:$0xff]  ;;  %v366_v24 = vld [vmem:[%s1794_s4 + $0x2e8] sm:$0xff] }
  0x27   : > { %v1925_v59 = vmul.f32 %v1866_v57, %v292_v28  ;;  %v526_v8 = vmul.f32 %v1828_v26, %v325_v44  ;;  %v565_v13 = vmul.f32 %v1805_v7, %v364_v45  ;;  %v725_v14 = vadd.f32 %v563_v35, %v562_v31  ;;  %v331_v21 = vld [vmem:[%s1794_s4 + $0x1d0] sm:$0xff]  ;;  %v332_v27 = vld [vmem:[%s1794_s4 + $0x1d8] sm:$0xff] }
  0x28   : > { %v634_v41 = vadd.f32 %v633_v20, %v481_v62  ;;  %v682_v9 = vadd.f32 %v681_v53, %v524_v29  ;;  %v1935_v15 = vmul.f32 %v1869_v60, %v293_v46  ;;  %v527_v23 = vmul.f32 %v1834_v32, %v326_v51  ;;  %v295_v35 = vld [vmem:[%s1794_s4 + $0xb0] sm:$0xff]  ;;  %v334_v53 = vld [vmem:[%s1794_s4 + $0x1e8] sm:$0xff] }
  0x29   : > { %v528_v28 = vmul.f32 %v1836_v33, %v327_v63  ;;  %v566_v30 = vmul.f32 %v1810_v11, %v365_v0  ;;  %v726_v31 = vadd.f32 %v725_v14, %v564_v54  ;;  %v529_v45 = vmul.f32 %v1838_v34, %v328_v3  ;;  %v367_v51 = vld [vmem:[%s1794_s4 + $0x2f0] sm:$0xff]  ;;  %v297_v0 = vld [vmem:[%s1794_s4 + $0xc0] sm:$0xff] }
  0x2a   : > { %v635_v62 = vadd.f32 %v634_v41, %v482_v10  ;;  %v495_v10 = vmul.f32 %v1871_v61, %v294_v47  ;;  %v683_v29 = vadd.f32 %v682_v9, %v525_v52  ;;  %v296_v41 = vld [vmem:[%s1794_s4 + $0xb8] sm:$0xff]  ;;  %v530_v46 = vmul.f32 %v1841_v36, %v329_v4 }
  0x2b   : > { %v531_v47 = vmul.f32 %v1843_v37, %v330_v6  ;;  %v1954_v52 = vmul.f32 %v1848_v42, %v331_v21  ;;  %v567_v63 = vmul.f32 %v1817_v17, %v366_v24  ;;  %v1960_v4 = vmul.f32 %v1850_v43, %v332_v27  ;;  %v368_v6 = vld [vmem:[%s1794_s4 + $0x2f8] sm:$0xff] }
  0x2c   : > { %v636_v20 = vadd.f32 %v635_v62, %v483_v12  ;;  %v333_v12 = vld [vmem:[%s1794_s4 + $0x1e0] sm:$0xff]  ;;  %v335_v62 = vld [vmem:[%s1794_s4 + $0x1f0] sm:$0xff]  ;;  %v684_v54 = vadd.f32 %v683_v29, %v526_v8  ;;  %v496_v9 = vmul.f32 %v1796_v1, %v295_v35  ;;  %v497_v14 = vmul.f32 %v1798_v2, %v296_v41  ;;  %v336_v29 = vld [vmem:[%s1794_s4 + $0x1f8] sm:$0xff] }
  0x2d   : > { %v1967_v8 = vmul.f32 %v1855_v48, %v333_v12  ;;  %v1977_v35 = vmul.f32 %v1864_v56, %v335_v62  ;;  %v369_v41 = vld [vmem:[%s1794_s4 + $0x300] sm:$0xff]  ;;  %v569_v12 = vmul.f32 %v1826_v25, %v368_v6 }
  0x2e   : > { %v637_v44 = vadd.f32 %v636_v20, %v484_v16  ;;  %v727_v16 = vadd.f32 %v726_v31, %v565_v13  ;;  %v338_v20 = vld [vmem:[%s1794_s4 + $0x208] sm:$0xff]  ;;  %v685_v21 = vadd.f32 %v684_v54, %v527_v23  ;;  %v568_v13 = vmul.f32 %v1822_v22, %v367_v51  ;;  %v299_v51 = vld [vmem:[%s1794_s4 + $0xd0] sm:$0xff]  ;;  %v337_v54 = vld [vmem:[%s1794_s4 + $0x200] sm:$0xff] }
  0x2f   : > { %v1974_v31 = vmul.f32 %v1857_v49, %v334_v53  ;;  %v539_v53 = vmul.f32 %v1871_v61, %v338_v20  ;;  %v570_v6 = vmul.f32 %v1828_v26, %v369_v41  ;;  %v1995_v20 = vsel %vm648_vm0, %v495_v10, 0.0 }
  0x30   : > { %v638_v3 = vadd.f32 %v637_v44, %v1886_v18  ;;  %v728_v24 = vadd.f32 %v727_v16, %v566_v30  ;;  %v298_v18 = vld [vmem:[%s1794_s4 + $0xc8] sm:$0xff]  ;;  %v498_v44 = vmul.f32 %v1802_v5, %v297_v0  ;;  %v686_v23 = vadd.f32 %v685_v21, %v528_v28  ;;  %v300_v21 = vld [vmem:[%s1794_s4 + $0xd8] sm:$0xff] }
  0x31   : > { %v370_v16 = vld [vmem:[%s1794_s4 + $0x308] sm:$0xff]  ;;  %v499_v62 = vmul.f32 %v1805_v7, %v298_v18  ;;  %v1989_v0 = vmul.f32 %v1866_v57, %v336_v29  ;;  %v2001_v18 = vmul.f32 %v1869_v60, %v337_v54 }
  0x32   : > { %v639_v27 = vadd.f32 %v638_v3, %v1889_v19  ;;  %v729_v30 = vadd.f32 %v728_v24, %v567_v63  ;;  %v653_v3 = vadd.f32 %v497_v14, %v496_v9  ;;  %v687_v28 = vadd.f32 %v686_v23, %v529_v45  ;;  %v371_v24 = vld [vmem:[%s1794_s4 + $0x310] sm:$0xff] }
  0x33   : > { %v500_v9 = vmul.f32 %v1810_v11, %v299_v51  ;;  %v571_v29 = vmul.f32 %v1834_v32, %v370_v16  ;;  %v2008_v23 = vsel %vm648_vm0, %v539_v53, 0.0  ;;  %v501_v51 = vmul.f32 %v1817_v17, %v300_v21 }
  0x34   : > { %v640_v19 = vadd.f32 %v639_v27, %v1900_v38  ;;  %v730_v63 = vadd.f32 %v729_v30, %v568_v13  ;;  %v372_v27 = vld [vmem:[%s1794_s4 + $0x318] sm:$0xff]  ;;  %v654_v14 = vadd.f32 %v653_v3, %v498_v44  ;;  %v688_v45 = vadd.f32 %v687_v28, %v530_v46  ;;  %v373_v13 = vld [vmem:[%s1794_s4 + $0x320] sm:$0xff]  ;;  %v374_v30 = vld [vmem:[%s1794_s4 + $0x328] sm:$0xff] }
  0x35   : > { %v302_v44 = vld [vmem:[%s1794_s4 + $0xe8] sm:$0xff]  ;;  %v572_v54 = vmul.f32 %v1836_v33, %v371_v24  ;;  %v573_v16 = vmul.f32 %v1838_v34, %v372_v27  ;;  %v339_v3 = vld [vmem:[%s1794_s4 + $0x210] sm:$0xff]  ;;  %v575_v24 = vmul.f32 %v1843_v37, %v374_v30 }
  0x36   : > { %v641_v38 = vadd.f32 %v640_v19, %v1903_v39  ;;  %v731_v41 = vadd.f32 %v730_v63, %v569_v12  ;;  %v301_v39 = vld [vmem:[%s1794_s4 + $0xe0] sm:$0xff]  ;;  %v655_v19 = vadd.f32 %v654_v14, %v499_v62  ;;  %v689_v46 = vadd.f32 %v688_v45, %v531_v47  ;;  %v375_v28 = vld [vmem:[%s1794_s4 + $0x330] sm:$0xff]  ;;  %v376_v63 = vld [vmem:[%s1794_s4 + $0x338] sm:$0xff] }
  0x37   : > { %v502_v62 = vmul.f32 %v1822_v22, %v301_v39  ;;  %v503_v14 = vmul.f32 %v1826_v25, %v302_v44  ;;  %v341_v45 = vld [vmem:[%s1794_s4 + $0x220] sm:$0xff]  ;;  %v540_v39 = vmul.f32 %v1796_v1, %v339_v3  ;;  %v577_v30 = vmul.f32 %v1850_v43, %v376_v63  ;;  %v343_v63 = vld [vmem:[%s1794_s4 + $0x230] sm:$0xff] }
  0x38   : > { %v642_v10 = vadd.f32 %v641_v38, %v1906_v40  ;;  %v732_v12 = vadd.f32 %v731_v41, %v570_v6  ;;  %v340_v40 = vld [vmem:[%s1794_s4 + $0x218] sm:$0xff]  ;;  %v574_v38 = vmul.f32 %v1841_v36, %v373_v13  ;;  %v656_v21 = vadd.f32 %v655_v19, %v500_v9  ;;  %v303_v6 = vld [vmem:[%s1794_s4 + $0xf0] sm:$0xff]  ;;  %v377_v41 = vld [vmem:[%s1794_s4 + $0x340] sm:$0xff] }
  0x39   : > { %v690_v47 = vadd.f32 %v689_v46, %v1954_v52  ;;  %v541_v9 = vmul.f32 %v1798_v2, %v340_v40  ;;  %v342_v19 = vld [vmem:[%s1794_s4 + $0x228] sm:$0xff]  ;;  %v542_v40 = vmul.f32 %v1802_v5, %v341_v45 }
  0x3a   : > { %v643_v53 = vadd.f32 %v642_v10, %v1913_v50  ;;  %v733_v27 = vadd.f32 %v732_v12, %v571_v29  ;;  %v304_v10 = vld [vmem:[%s1794_s4 + $0xf8] sm:$0xff]  ;;  %v657_v13 = vadd.f32 %v656_v21, %v501_v51  ;;  %v576_v29 = vmul.f32 %v1848_v42, %v375_v28  ;;  %v378_v46 = vld [vmem:[%s1794_s4 + $0x348] sm:$0xff]  ;;  %v305_v12 = vld [vmem:[%s1794_s4 + $0x100] sm:$0xff] }
  0x3b   : > { %v691_v52 = vadd.f32 %v690_v47, %v1960_v4  ;;  %v504_v51 = vmul.f32 %v1828_v26, %v303_v6  ;;  %v382_v21 = vld [vmem:[%s1794_s4 + $0x368] sm:$0xff]  ;;  %v701_v6 = vadd.f32 %v541_v9, %v540_v39 }
  0x3c   : > { %v644_v50 = vadd.f32 %v643_v53, %v1919_v55  ;;  %v734_v44 = vadd.f32 %v733_v27, %v572_v54  ;;  %v658_v3 = vadd.f32 %v657_v13, %v502_v62  ;;  %v578_v53 = vmul.f32 %v1855_v48, %v377_v41  ;;  %v306_v47 = vld [vmem:[%s1794_s4 + $0x108] sm:$0xff]  ;;  %v344_v41 = vld [vmem:[%s1794_s4 + $0x238] sm:$0xff] }
  0x3d   : > { %v692_v4 = vadd.f32 %v691_v52, %v1967_v8  ;;  %v505_v54 = vmul.f32 %v1834_v32, %v304_v10  ;;  %v543_v62 = vmul.f32 %v1805_v7, %v342_v19  ;;  %v579_v8 = vmul.f32 %v1857_v49, %v378_v46  ;;  %v379_v10 = vld [vmem:[%s1794_s4 + $0x350] sm:$0xff]  ;;  %v380_v13 = vld [vmem:[%s1794_s4 + $0x358] sm:$0xff] }
  0x3e   : > { %v645_v55 = vadd.f32 %v644_v50, %v1922_v58  ;;  %v735_v28 = vadd.f32 %v734_v44, %v573_v16  ;;  %v659_v27 = vadd.f32 %v658_v3, %v503_v14  ;;  %v506_v16 = vmul.f32 %v1836_v33, %v305_v12  ;;  %v308_v12 = vld [vmem:[%s1794_s4 + $0x118] sm:$0xff] }
  0x3f   : > { %v693_v45 = vadd.f32 %v692_v4, %v1974_v31  ;;  %v544_v52 = vmul.f32 %v1810_v11, %v343_v63  ;;  %v702_v44 = vadd.f32 %v701_v6, %v542_v40  ;;  %v583_v31 = vmul.f32 %v1871_v61, %v382_v21  ;;  %v346_v63 = vld [vmem:[%s1794_s4 + $0x248] sm:$0xff]  ;;  %v309_v6 = vld [vmem:[%s1794_s4 + $0x120] sm:$0xff] }
  0x40   : > { %v646_v58 = vadd.f32 %v645_v55, %v1925_v59  ;;  %v736_v50 = vadd.f32 %v735_v28, %v574_v38  ;;  %v660_v14 = vadd.f32 %v659_v27, %v504_v51  ;;  %v307_v38 = vld [vmem:[%s1794_s4 + $0x110] sm:$0xff]  ;;  %v507_v19 = vmul.f32 %v1838_v34, %v306_v47  ;;  %v345_v55 = vld [vmem:[%s1794_s4 + $0x240] sm:$0xff]  ;;  %v384_v27 = vld [vmem:[%s1794_s4 + $0x378] sm:$0xff] }
  0x41   : > { %v694_v39 = vadd.f32 %v693_v45, %v1977_v35  ;;  %v545_v3 = vmul.f32 %v1817_v17, %v344_v41  ;;  %v703_v40 = vadd.f32 %v702_v44, %v543_v62  ;;  %v580_v4 = vmul.f32 %v1864_v56, %v379_v10  ;;  %v383_v47 = vld [vmem:[%s1794_s4 + $0x370] sm:$0xff]  ;;  %v310_v41 = vld [vmem:[%s1794_s4 + $0x128] sm:$0xff]  ;;  %v312_v44 = vld [vmem:[%s1794_s4 + $0x138] sm:$0xff] }
  0x42   : > { %v647_v59 = vadd.f32 %v646_v58, %v1935_v15  ;;  %v737_v9 = vadd.f32 %v736_v50, %v575_v24  ;;  %v381_v15 = vld [vmem:[%s1794_s4 + $0x360] sm:$0xff]  ;;  %v661_v51 = vadd.f32 %v660_v14, %v505_v54  ;;  %v581_v24 = vmul.f32 %v1866_v57, %v380_v13  ;;  %v347_v50 = vld [vmem:[%s1794_s4 + $0x250] sm:$0xff] }
  0x43   : > { %v695_v35 = vadd.f32 %v694_v39, %v1989_v0  ;;  %v546_v54 = vmul.f32 %v1822_v22, %v345_v55  ;;  %v704_v21 = vadd.f32 %v703_v40, %v544_v52  ;;  %v582_v62 = vmul.f32 %v1869_v60, %v381_v15  ;;  %v348_v39 = vld [vmem:[%s1794_s4 + $0x258] sm:$0xff]  ;;  %v349_v40 = vld [vmem:[%s1794_s4 + $0x260] sm:$0xff] }
  0x44   : > { %v650_v46 = vadd.f32 %v1995_v20, %v647_v59  ;;  %v738_v28 = vadd.f32 %v737_v9, %v576_v29  ;;  %v508_v20 = vmul.f32 %v1841_v36, %v307_v38  ;;  %v662_v58 = vadd.f32 %v661_v51, %v506_v16  ;;  %v311_v59 = vld [vmem:[%s1794_s4 + $0x130] sm:$0xff]  ;;  %v316_v38 = vld [vmem:[%s1794_s4 + $0x158] sm:$0xff] }
  0x45   : > { %v696_v0 = vadd.f32 %v695_v35, %v2001_v18  ;;  %v509_v45 = vmul.f32 %v1843_v37, %v308_v12  ;;  %v2080_v16 = vsel %vm648_vm0, %v583_v31, 0.0  ;;  %v547_v13 = vmul.f32 %v1826_v25, %v346_v63  ;;  %v385_v18 = vld [vmem:[%s1794_s4 + $0x380] sm:$0xff]  ;;  %v386_v12 = vld [vmem:[%s1794_s4 + $0x388] sm:$0xff] }
  0x46   : > { %651 = vadd.xlane.f32.xlu0 %v650_v46  ;;  %v739_v29 = vadd.f32 %v738_v28, %v577_v30  ;;  %v663_v10 = vadd.f32 %v662_v58, %v507_v19  ;;  %v705_v14 = vadd.f32 %v704_v21, %v545_v3  ;;  %v584_v9 = vmul.f32 %v1796_v1, %v383_v47  ;;  %v314_v28 = vld [vmem:[%s1794_s4 + $0x148] sm:$0xff]  ;;  %v387_v21 = vld [vmem:[%s1794_s4 + $0x390] sm:$0xff] }
  0x47   : > { %v698_v52 = vadd.f32 %v2008_v23, %v696_v0  ;;  %v585_v31 = vmul.f32 %v1798_v2, %v384_v27  ;;  %v510_v55 = vmul.f32 %v1848_v42, %v309_v6  ;;  %v548_v46 = vmul.f32 %v1828_v26, %v347_v50  ;;  %v315_v47 = vld [vmem:[%s1794_s4 + $0x150] sm:$0xff]  ;;  %v350_v0 = vld [vmem:[%s1794_s4 + $0x268] sm:$0xff] }
  0x48   : > { %v740_v30 = vadd.f32 %v739_v29, %v578_v53  ;;  %v664_v19 = vadd.f32 %v663_v10, %v508_v20  ;;  %v706_v15 = vadd.f32 %v705_v14, %v546_v54  ;;  %v313_v53 = vld [vmem:[%s1794_s4 + $0x140] sm:$0xff]  ;;  %v511_v51 = vmul.f32 %v1850_v43, %v310_v41  ;;  %v388_v10 = vld [vmem:[%s1794_s4 + $0x398] sm:$0xff]  ;;  %v351_v14 = vld [vmem:[%s1794_s4 + $0x270] sm:$0xff] }
  0x49   : > { %699 = vadd.xlane.f32.xlu1 %v698_v52  ;;  %v512_v3 = vmul.f32 %v1855_v48, %v311_v59  ;;  %v586_v35 = vmul.f32 %v1802_v5, %v385_v18  ;;  %v513_v63 = vmul.f32 %v1857_v49, %v312_v44  ;;  %v549_v58 = vmul.f32 %v1834_v32, %v348_v39  ;;  %v352_v18 = vld [vmem:[%s1794_s4 + $0x278] sm:$0xff] }
  0x4a   : > { %v741_v23 = vadd.f32 %v740_v30, %v579_v8  ;;  %v665_v20 = vadd.f32 %v664_v19, %v509_v45  ;;  %v707_v54 = vadd.f32 %v706_v15, %v547_v13  ;;  %v517_v27 = vmul.f32 %v1871_v61, %v316_v38 }
  0x4b   : > { %v587_v29 = vmul.f32 %v1805_v7, %v386_v12  ;;  %v749_v6 = vadd.f32 %v585_v31, %v584_v9  ;;  %v514_v50 = vmul.f32 %v1864_v56, %v313_v53  ;;  %v550_v45 = vmul.f32 %v1836_v33, %v349_v40  ;;  %v353_v9 = vld [vmem:[%s1794_s4 + $0x280] sm:$0xff] }
  0x4c   : > { %v742_v8 = vadd.f32 %v741_v23, %v580_v4  ;;  %v666_v41 = vadd.f32 %v665_v20, %v510_v55  ;;  %v708_v59 = vadd.f32 %v707_v54, %v548_v46  ;;  %v515_v4 = vmul.f32 %v1866_v57, %v314_v28  ;;  %v405_v12 = vld [vmem:[%s1794_s4 + $0x420] sm:$0x3]  ;;  %v406_v23 = vld [vmem:[%s1794_s4 + $0x428] sm:$0x3]  ;;  %v355_v54 = vld [vmem:[%s1794_s4 + $0x290] sm:$0xff] }
  0x4d   : > { %v588_v52 = vmul.f32 %v1810_v11, %v387_v21  ;;  %v750_v30 = vadd.f32 %v749_v6, %v586_v35  ;;  %v516_v44 = vmul.f32 %v1869_v60, %v315_v47  ;;  %v551_v31 = vmul.f32 %v1838_v34, %v350_v0  ;;  %v390_v20 = vld [vmem:[%s1794_s4 + $0x3a8] sm:$0xff]  ;;  %v409_v6 = vld [vmem:[%s1794_s4 + $0x440] sm:$0x3] }
  0x4e   : > { %v743_v13 = vadd.f32 %v742_v8, %v581_v24  ;;  %v667_v39 = vadd.f32 %v666_v41, %v511_v51  ;;  %v709_v38 = vadd.f32 %v708_v59, %v549_v58  ;;  %v389_v24 = vld [vmem:[%s1794_s4 + $0x3a0] sm:$0xff]  ;;  %v673_v19 = vsel %vm648_vm0, %v517_v27, 0.0  ;;  %v354_v51 = vld [vmem:[%s1794_s4 + $0x288] sm:$0xff]  ;;  %v407_v58 = vld [vmem:[%s1794_s4 + $0x430] sm:$0x3] }
  0x4f   : > { %v589_v46 = vmul.f32 %v1817_v17, %v388_v10  ;;  %v751_v15 = vadd.f32 %v750_v30, %v587_v29  ;;  %v552_v40 = vmul.f32 %v1841_v36, %v351_v14  ;;  %v553_v35 = vmul.f32 %v1843_v37, %v352_v18  ;;  %v408_v27 = vld [vmem:[%s1794_s4 + $0x438] sm:$0x3]  ;;  %v391_v29 = vld [vmem:[%s1794_s4 + $0x3b0] sm:$0xff] }
  0x50   : > { %v744_v55 = vadd.f32 %v743_v13, %v582_v62  ;;  %v668_v53 = vadd.f32 %v667_v39, %v512_v3  ;;  %v710_v28 = vadd.f32 %v709_v38, %v550_v45  ;;  %v554_v21 = vmul.f32 %v1848_v42, %v353_v9  ;;  %v410_v39 = vld [vmem:[%s1794_s4 + $0x448] sm:$0x3]  ;;  %v356_v38 = vld [vmem:[%s1794_s4 + $0x298] sm:$0xff] }
  0x51   : > { %v590_v8 = vmul.f32 %v1822_v22, %v389_v24  ;;  %v752_v47 = vadd.f32 %v751_v15, %v588_v52  ;;  %v606_v41 = vmul.f32 %v1796_v1, %v405_v12  ;;  %v607_v45 = vmul.f32 %v1798_v2, %v406_v23  ;;  %v392_v52 = vld [vmem:[%s1794_s4 + $0x3b8] sm:$0xff]  ;;  %v411_v15 = vld [vmem:[%s1794_s4 + $0x450] sm:$0x3] }
  0x52   : > { %v746_v62 = vadd.f32 %v2080_v16, %v744_v55  ;;  %v669_v3 = vadd.f32 %v668_v53, %v513_v63  ;;  %v711_v0 = vadd.f32 %v710_v28, %v551_v31  ;;  %v555_v16 = vmul.f32 %v1850_v43, %v354_v51  ;;  %v394_v53 = vld [vmem:[%s1794_s4 + $0x3c8] sm:$0xff] }
  0x53   : > { %v591_v59 = vmul.f32 %v1826_v25, %v390_v20  ;;  %v753_v10 = vadd.f32 %v752_v47, %v589_v46  ;;  %v608_v13 = vmul.f32 %v1802_v5, %v407_v58  ;;  %v556_v63 = vmul.f32 %v1855_v48, %v355_v54 }
  0x54   : > { %747 = vadd.xlane.f32.xlu2 %v746_v62  ;;  %v670_v14 = vadd.f32 %v669_v3, %v514_v50  ;;  %v712_v18 = vadd.f32 %v711_v0, %v552_v40  ;;  %v609_v1 = vmul.f32 %v1805_v7, %v408_v27  ;;  %v592_v2 = vmul.f32 %v1828_v26, %v391_v29  ;;  %v393_v50 = vld [vmem:[%s1794_s4 + $0x3c0] sm:$0xff]  ;;  %v412_v62 = vld [vmem:[%s1794_s4 + $0x458] sm:$0x3]  ;;  %v358_v27 = vld [vmem:[%s1794_s4 + $0x2a8] sm:$0xff] }
  0x55   : > { %v754_v30 = vadd.f32 %v753_v10, %v590_v8  ;;  %v610_v9 = vmul.f32 %v1810_v11, %v409_v6  ;;  %v774_v24 = vsel %vm773_vm1, %v606_v41, 0.0  ;;  %v775_v55 = vsel %vm773_vm1, %v607_v45, 0.0  ;;  %v413_v29 = vld [vmem:[%s1794_s4 + $0x460] sm:$0x3]  ;;  %v360_v41 = vld [vmem:[%s1794_s4 + $0x2b8] sm:$0xff]  ;;  %v359_v10 = vld [vmem:[%s1794_s4 + $0x2b0] sm:$0xff] }
  0x56   : > { %v671_v31 = vadd.f32 %v670_v14, %v515_v4  ;;  %v713_v5 = vadd.f32 %v712_v18, %v553_v35  ;;  %v593_v7 = vmul.f32 %v1834_v32, %v392_v52  ;;  %v776_v12 = vadd.f32 %v775_v55, %v774_v24  ;;  %v357_v35 = vld [vmem:[%s1794_s4 + $0x2a0] sm:$0xff]  ;;  %v414_v18 = vld [vmem:[%s1794_s4 + $0x468] sm:$0x3] }
  0x57   : > { %v755_v46 = vadd.f32 %v754_v30, %v591_v59  ;;  %v777_v23 = vsel %vm773_vm1, %v608_v13, 0.0  ;;  %v611_v51 = vmul.f32 %v1817_v17, %v410_v39  ;;  %v779_v40 = vsel %vm773_vm1, %v609_v1, 0.0  ;;  %v397_v30 = vld [vmem:[%s1794_s4 + $0x3e0] sm:$0xff]  ;;  %v398_v55 = vld [vmem:[%s1794_s4 + $0x3e8] sm:$0xff] }
  0x58   : > { %v672_v11 = vadd.f32 %v671_v31, %v516_v44  ;;  %v714_v4 = vadd.f32 %v713_v5, %v554_v21  ;;  %v557_v28 = vmul.f32 %v1857_v49, %v356_v38  ;;  %v594_v20 = vmul.f32 %v1836_v33, %v393_v50  ;;  %v395_v21 = vld [vmem:[%s1794_s4 + $0x3d0] sm:$0xff] }
  0x59   : > { %v756_v58 = vadd.f32 %v755_v46, %v592_v2  ;;  %v778_v54 = vadd.f32 %v777_v23, %v776_v12  ;;  %v612_v47 = vmul.f32 %v1822_v22, %v411_v15  ;;  %v781_v17 = vsel %vm773_vm1, %v610_v9, 0.0  ;;  %v415_v38 = vld [vmem:[%s1794_s4 + $0x470] sm:$0x3]  ;;  %v416_v12 = vld [vmem:[%s1794_s4 + $0x478] sm:$0x3] }
  0x5a   : > { %v674_v8 = vadd.f32 %v673_v19, %v672_v11  ;;  %v715_v44 = vadd.f32 %v714_v4, %v555_v16  ;;  %v595_v3 = vmul.f32 %v1838_v34, %v394_v53  ;;  %v558_v45 = vmul.f32 %v1864_v56, %v357_v35  ;;  %v396_v16 = vld [vmem:[%s1794_s4 + $0x3d8] sm:$0xff]  ;;  %v399_v4 = vld [vmem:[%s1794_s4 + $0x3f0] sm:$0xff] }
  0x5b   : > { %v757_v0 = vadd.f32 %v756_v58, %v593_v7  ;;  %v780_v6 = vadd.f32 %v779_v40, %v778_v54  ;;  %v613_v59 = vmul.f32 %v1826_v25, %v412_v62  ;;  %v783_v22 = vsel %vm773_vm1, %v611_v51, 0.0  ;;  %v400_v62 = vld [vmem:[%s1794_s4 + $0x3f8] sm:$0xff] }
  0x5c   : > { %675 = vadd.xlane.f32.xlu0 %v674_v8  ;;  %v716_v19 = vadd.f32 %v715_v44, %v556_v63  ;;  %v596_v13 = vmul.f32 %v1841_v36, %v395_v21  ;;  %v559_v1 = vmul.f32 %v1866_v57, %v358_v27  ;;  %v614_v63 = vmul.f32 %v1828_v26, %v413_v29  ;;  %v418_v21 = vld [vmem:[%s1794_s4 + $0x488] sm:$0x3]  ;;  %v401_v27 = vld [vmem:[%s1794_s4 + $0x400] sm:$0xff] }
  0x5d   : > { %v758_v14 = vadd.f32 %v757_v0, %v594_v20  ;;  %v782_v52 = vadd.f32 %v781_v17, %v780_v6  ;;  %v785_v39 = vsel %vm773_vm1, %v612_v47, 0.0  ;;  %v561_v25 = vmul.f32 %v1871_v61, %v360_v41 }
  0x5e   : > { %v717_v2 = vadd.f32 %v716_v19, %v557_v28  ;;  %v597_v9 = vmul.f32 %v1843_v37, %v396_v16  ;;  %v560_v50 = vmul.f32 %v1869_v60, %v359_v10  ;;  %v615_v7 = vmul.f32 %v1834_v32, %v414_v18  ;;  %v417_v28 = vld [vmem:[%s1794_s4 + $0x480] sm:$0x3] }
  0x5f   : > { %v759_v31 = vadd.f32 %v758_v14, %v595_v3  ;;  %v784_v5 = vadd.f32 %v783_v22, %v782_v52  ;;  %v787_v26 = vsel %vm773_vm1, %v613_v59, 0.0  ;;  %v598_v46 = vmul.f32 %v1848_v42, %v397_v30  ;;  %v404_v59 = vld [vmem:[%s1794_s4 + $0x418] sm:$0xff]  ;;  %v403_v14 = vld [vmem:[%s1794_s4 + $0x410] sm:$0xff]  ;;  %v421_v30 = vld [vmem:[%s1794_s4 + $0x4a0] sm:$0x3] }
  0x60   : > { %v718_v24 = vadd.f32 %v717_v2, %v558_v45  ;;  %v616_v53 = vmul.f32 %v1836_v33, %v415_v38  ;;  %v789_v51 = vsel %vm773_vm1, %v614_v63, 0.0  ;;  %v721_v40 = vsel %vm648_vm0, %v561_v25, 0.0  ;;  %v402_v45 = vld [vmem:[%s1794_s4 + $0x408] sm:$0xff] }
  0x61   : > { %v760_v15 = vadd.f32 %v759_v31, %v596_v13  ;;  %v786_v23 = vadd.f32 %v785_v39, %v784_v5  ;;  %v599_v32 = vmul.f32 %v1850_v43, %v398_v55  ;;  %v617_v54 = vmul.f32 %v1838_v34, %v416_v12  ;;  %v419_v34 = vld [vmem:[%s1794_s4 + $0x490] sm:$0x3]  ;;  %v422_v38 = vld [vmem:[%s1794_s4 + $0x4a8] sm:$0x3]  ;;  %v424_v12 = vld [vmem:[%s1794_s4 + $0x4b8] sm:$0x3] }
  0x62   : > { %v719_v11 = vadd.f32 %v718_v24, %v559_v1  ;;  %v791_v8 = vsel %vm773_vm1, %v615_v7, 0.0  ;;  %v600_v33 = vmul.f32 %v1855_v48, %v399_v4  ;;  %v618_v3 = vmul.f32 %v1841_v36, %v417_v28  ;;  %v420_v36 = vld [vmem:[%s1794_s4 + $0x498] sm:$0x3]  ;;  %v423_v55 = vld [vmem:[%s1794_s4 + $0x4b0] sm:$0x3] }
  0x63   : > { %v761_v35 = vadd.f32 %v760_v15, %v597_v9  ;;  %v788_v20 = vadd.f32 %v787_v26, %v786_v23  ;;  %v793_v0 = vsel %vm773_vm1, %v616_v53, 0.0  ;;  %v601_v29 = vmul.f32 %v1857_v49, %v400_v62  ;;  %v425_v53 = vld [vmem:[%s1794_s4 + $0x4c0] sm:$0x3] }
  0x64   : > { %v720_v58 = vadd.f32 %v719_v11, %v560_v50  ;;  %v619_v19 = vmul.f32 %v1843_v37, %v418_v21  ;;  %v795_v16 = vsel %vm773_vm1, %v617_v54, 0.0  ;;  %v602_v22 = vmul.f32 %v1864_v56, %v401_v27  ;;  %v829_v27 = vld [vmem:[%s2243_s7 + $0x10] sm:$0xff] }
  0x65   : > { %v762_v44 = vadd.f32 %v761_v35, %v598_v46  ;;  %v790_v47 = vadd.f32 %v789_v51, %v788_v20  ;;  %v620_v18 = vmul.f32 %v1848_v42, %v419_v34  ;;  %v797_v52 = vsel %vm773_vm1, %v618_v3, 0.0  ;;  %v426_v35 = vld [vmem:[%s1794_s4 + $0x4c8] sm:$0x3]  ;;  %v830_v3 = vld [vmem:[%s2243_s7 + $0x18] sm:$0xff]  ;;  %v833_v34 = vld [vmem:[%s2243_s7 + $0x30] sm:$0xff] }
  0x66   : > { %v722_v17 = vadd.f32 %v721_v40, %v720_v58  ;;  %v603_v1 = vmul.f32 %v1866_v57, %v402_v45  ;;  %v605_v63 = vmul.f32 %v1871_v61, %v404_v59  ;;  %v621_v39 = vmul.f32 %v1850_v43, %v420_v36  ;;  %v835_v45 = vld [vmem:[%s2243_s7 + $0x40] sm:$0xff]  ;;  %v838_v59 = vld [vmem:[%s2243_s7 + $0x58] sm:$0xff]  ;;  %v841_v36 = vld [vmem:[%s2243_s7 + $0x70] sm:$0xff] }
  0x67   : > { %v763_v6 = vadd.f32 %v762_v44, %v599_v32  ;;  %v792_v41 = vadd.f32 %v791_v8, %v790_v47  ;;  %v799_v25 = vsel %vm773_vm1, %v619_v19, 0.0  ;;  %v604_v9 = vmul.f32 %v1869_v60, %v403_v14  ;;  %v828_v47 = vld [vmem:[%s2243_s7 + $0x8] sm:$0xff]  ;;  %v843_v14 = vld [vmem:[%s2243_s7 + $0x80] sm:$0xff] }
  0x68   : > { %723 = vadd.xlane.f32.xlu1 %v722_v17  ;;  %v622_v5 = vmul.f32 %v1855_v48, %v421_v30  ;;  %v801_v50 = vsel %vm773_vm1, %v620_v18, 0.0  ;;  %v769_v26 = vsel %vm648_vm0, %v605_v63, 0.0  ;;  %v623_v43 = vmul.f32 %v1857_v49, %v422_v38  ;;  %v836_v19 = vld [vmem:[%s2243_s7 + $0x48] sm:$0xff] }
  0x69   : > { %v764_v10 = vadd.f32 %v763_v6, %v600_v33  ;;  %v794_v13 = vadd.f32 %v793_v0, %v792_v41  ;;  %v803_v46 = vsel %vm773_vm1, %v621_v39, 0.0  ;;  %v624_v11 = vmul.f32 %v1864_v56, %v423_v55  ;;  %v831_v0 = vld [vmem:[%s2243_s7 + $0x20] sm:$0xff]  ;;  %v834_v41 = vld [vmem:[%s2243_s7 + $0x38] sm:$0xff] }
  0x6a   : > { %v805_v4 = vsel %vm773_vm1, %v622_v5, 0.0  ;;  %v625_v40 = vmul.f32 %v1866_v57, %v424_v12  ;;  %v807_v32 = vsel %vm773_vm1, %v623_v43, 0.0  ;;  %v626_v28 = vmul.f32 %v1869_v60, %v425_v53  ;;  %v847_v39 = vld [vmem:[%s2243_s7 + $0xa0] sm:$0xff]  ;;  %v850_v55 = vld [vmem:[%s2243_s7 + $0xb8] sm:$0xff]  ;;  %v852_v12 = vld [vmem:[%s2243_s7 + $0xc8] sm:$0xff] }
  0x6b   : > { %v765_v2 = vadd.f32 %v764_v10, %v601_v29  ;;  %v796_v37 = vadd.f32 %v795_v16, %v794_v13  ;;  %v809_v20 = vsel %vm773_vm1, %v624_v11, 0.0  ;;  %v627_v56 = vmul.f32 %v1871_v61, %v426_v35  ;;  %v827_v61 = vld [vmem:[%s2243_s7] sm:$0xff]  ;;  %v832_v29 = vld [vmem:[%s2243_s7 + $0x28] sm:$0xff]  ;;  %v837_v16 = vld [vmem:[%s2243_s7 + $0x50] sm:$0xff] }
  0x6c   : > { %v811_v62 = vsel %vm773_vm1, %v625_v40, 0.0  ;;  %v813_v8 = vsel %vm773_vm1, %v626_v28, 0.0  ;;  %v840_v10 = vld [vmem:[%s2243_s7 + $0x68] sm:$0xff]  ;;  %v842_v13 = vld [vmem:[%s2243_s7 + $0x78] sm:$0xff]  ;;  %v855_v35 = vld [vmem:[%s2243_s7 + $0xe0] sm:$0xff] }
  0x6d   : > { %v766_v31 = vadd.f32 %v765_v2, %v602_v22  ;;  %v798_v42 = vadd.f32 %v797_v52, %v796_v37  ;;  %v816_v33 = vsel %vm815_vm2, %v627_v56, 0.0  ;;  %v839_v22 = vld [vmem:[%s2243_s7 + $0x60] sm:$0xff]  ;;  %v844_v52 = vld [vmem:[%s2243_s7 + $0x88] sm:$0xff]  ;;  %v846_v2 = vld [vmem:[%s2243_s7 + $0x98] sm:$0xff] }
  0x6e   : > { %v854_v11 = vld [vmem:[%s2243_s7 + $0xd8] sm:$0xff]  ;;  %v857_v28 = vld [vmem:[%s2243_s7 + $0xf0] sm:$0xff] }
  0x6f   : > { %v767_v24 = vadd.f32 %v766_v31, %v603_v1  ;;  %v800_v7 = vadd.f32 %v799_v25, %v798_v42  ;;  %v845_v1 = vld [vmem:[%s2243_s7 + $0x90] sm:$0xff]  ;;  %v848_v25 = vld [vmem:[%s2243_s7 + $0xa8] sm:$0xff] }
  0x70   : > { %v872_v31 = vld [vmem:[%s2243_s7 + $0x168] sm:$0xff] }
  0x71   : > { %v768_v15 = vadd.f32 %v767_v24, %v604_v9  ;;  %v802_v23 = vadd.f32 %v801_v50, %v800_v7  ;;  %v871_v9 = vld [vmem:[%s2243_s7 + $0x160] sm:$0xff]  ;;  %v849_v24 = vld [vmem:[%s2243_s7 + $0xb0] sm:$0xff] }
  0x72   : > { %v851_v7 = vld [vmem:[%s2243_s7 + $0xc0] sm:$0xff] }
  0x73   : > { %v770_v48 = vadd.f32 %v769_v26, %v768_v15  ;;  %v804_v51 = vadd.f32 %v803_v46, %v802_v23  ;;  %v853_v23 = vld [vmem:[%s2243_s7 + $0xd0] sm:$0xff] }
  0x75   : > { %771 = vadd.xlane.f32.xlu2 %v770_v48  ;;  %v806_v49 = vadd.f32 %v805_v4, %v804_v51 }
  0x77   : > { %v808_v58 = vadd.f32 %v807_v32, %v806_v49  ;;  %v856_v49 = vld [vmem:[%s2243_s7 + $0xe8] sm:$0xff] }
  0x79   : > { %v810_v54 = vadd.f32 %v809_v20, %v808_v58 }
  0x7b   : > { %v812_v57 = vadd.f32 %v811_v62, %v810_v54  ;;  %v858_v54 = vld [vmem:[%s2243_s7 + $0xf8] sm:$0xff] }
  0x7d   : > { %v814_v44 = vadd.f32 %v813_v8, %v812_v57  ;;  %v859_v8 = vld [vmem:[%s2243_s7 + $0x100] sm:$0xff]  ;;  %v860_v57 = vld [vmem:[%s2243_s7 + $0x108] sm:$0xff] }
  0x7f   : > { %v817_v21 = vadd.f32 %v816_v33, %v814_v44 }
  0x81   : > { %818 = vadd.xlane.f32.xlu0 %v817_v21 }
  0xb9   : > { %v652_v60 = vpop.xlane.xlu0 %651 }
  0xba   : > { %v2247_v17 = vmul.f32 0.25, %v652_v60  ;;  %v861_v60 = vld [vmem:[%s2243_s7 + $0x110] sm:$0xff] }
  0xbc   : > { %v700_v6 = vpop.xlane.xlu1 %699  ;;  %v2270_v30 = vmul.f32 %v827_v61, %v2247_v17  ;;  %v2273_v37 = vmul.f32 %v828_v47, %v2247_v17  ;;  %v2280_v38 = vmul.f32 %v829_v27, %v2247_v17  ;;  %v2283_v42 = vmul.f32 %v830_v3, %v2247_v17  ;;  %v862_v61 = vld [vmem:[%s2243_s7 + $0x118] sm:$0xff]  ;;  %v863_v47 = vld [vmem:[%s2243_s7 + $0x120] sm:$0xff] }
  0xbd   : > { %v2264_v18 = vmul.f32 0.25, %v700_v6  ;;  %v2286_v5 = vmul.f32 %v831_v0, %v2247_v17  ;;  %v2289_v50 = vmul.f32 %v832_v29, %v2247_v17  ;;  %v2295_v26 = vmul.f32 %v833_v34, %v2247_v17  ;;  %v864_v6 = vld [vmem:[%s2243_s7 + $0x128] sm:$0xff]  ;;  %v865_v34 = vld [vmem:[%s2243_s7 + $0x130] sm:$0xff] }
  0xbe   : > { %v2298_v43 = vmul.f32 %v834_v41, %v2247_v17  ;;  %v2301_v46 = vmul.f32 %v835_v45, %v2247_v17  ;;  %v2304_v15 = vmul.f32 %v836_v19, %v2247_v17  ;;  %v2310_v4 = vmul.f32 %v837_v16, %v2247_v17  ;;  %v866_v41 = vld [vmem:[%s2243_s7 + $0x138] sm:$0xff] }
  0xbf   : > { %v2313_v48 = vmul.f32 %v838_v59, %v2247_v17  ;;  %v2316_v53 = vmul.f32 %v839_v22, %v2247_v17  ;;  %v2319_v51 = vmul.f32 %v840_v10, %v2247_v17  ;;  %v2327_v20 = vmul.f32 %v841_v36, %v2247_v17  ;;  %v867_v59 = vld [vmem:[%s2243_s7 + $0x140] sm:$0xff]  ;;  %v868_v22 = vld [vmem:[%s2243_s7 + $0x148] sm:$0xff]  ;;  %v869_v10 = vld [vmem:[%s2243_s7 + $0x150] sm:$0xff] }
  0xc0   : > { %v2330_v58 = vmul.f32 %v842_v13, %v2247_v17  ;;  %v2333_v56 = vmul.f32 %v843_v14, %v2247_v17  ;;  %v2339_v33 = vmul.f32 %v844_v52, %v2247_v17  ;;  %v2342_v44 = vmul.f32 %v845_v1, %v2247_v17  ;;  %v870_v1 = vld [vmem:[%s2243_s7 + $0x158] sm:$0xff] }
  0xc1   : > { %3036 = vst [vmem:[#allocation2_spill] sm:$0xff] %v2313_v48  ;;  %v2345_v21 = vmul.f32 %v846_v2, %v2247_v17  ;;  %v2351_v27 = vmul.f32 %v847_v39, %v2247_v17  ;;  %v2354_v3 = vmul.f32 %v848_v25, %v2247_v17  ;;  %v2357_v0 = vmul.f32 %v871_v9, %v2264_v18  ;;  %v873_v2 = vld [vmem:[%s2243_s7 + $0x170] sm:$0xff] }
  0xc2   : > { %3037 = vst [vmem:[#allocation3_spill] sm:$0xff] %v2316_v53  ;;  %v2360_v29 = vmul.f32 %v872_v31, %v2264_v18 }
  0xc3   : > { %3038 = vst [vmem:[#allocation4_spill] sm:$0xff] %v2319_v51 }
  0xc4   : > { %3039 = vst [vmem:[#allocation5_spill] sm:$0xff] %v2327_v20 }
  0xc5   : > { %3040 = vst [vmem:[#allocation6_spill] sm:$0xff] %v2330_v58  ;;  %v897_v58 = vld [vmem:[%s2243_s7 + $0x230] sm:$0xff] }
  0xc6   : > { %3041 = vst [vmem:[#allocation7_spill] sm:$0xff] %v2333_v56  ;;  %v895_v56 = vld [vmem:[%s2243_s7 + $0x220] sm:$0xff] }
  0xc7   : > { %v748_v63 = vpop.xlane.xlu2 %747  ;;  %3042 = vst [vmem:[#allocation8_spill] sm:$0xff] %v2339_v33  ;;  %v893_v33 = vld [vmem:[%s2243_s7 + $0x210] sm:$0xff] }
  0xc8   : > { %v2321_v32 = vmul.f32 0.25, %v748_v63  ;;  %3043 = vst [vmem:[#allocation9_spill] sm:$0xff] %v2342_v44  ;;  %v874_v63 = vld [vmem:[%s2243_s7 + $0x178] sm:$0xff]  ;;  %v892_v44 = vld [vmem:[%s2243_s7 + $0x208] sm:$0xff] }
  0xc9   : > { %3044 = vst [vmem:[#allocation10_spill] sm:$0xff] %v2345_v21  ;;  %v2425_v21 = vmul.f32 %v873_v2, %v2264_v18  ;;  %v887_v2 = vld [vmem:[%s2243_s7 + $0x1e0] sm:$0xff] }
  0xca   : > { %3045 = vst [vmem:[#allocation11_spill] sm:$0xff] %v2351_v27 }
  0xcb   : > { %3046 = vst [vmem:[#allocation12_spill] sm:$0xff] %v2354_v3 }
  0xcf   : > { %v676_v40 = vpop.xlane.xlu0 %675 }
  0xd0   : > { %v821_v62 = vmul.f32 0.25, %v676_v40 }
  0xd2   : > { %v2365_v45 = vmul.f32 %v849_v24, %v821_v62  ;;  %v2367_v19 = vmul.f32 %v850_v55, %v821_v62  ;;  %v2369_v16 = vmul.f32 %v851_v7, %v821_v62  ;;  %v2371_v17 = vmul.f32 %v852_v12, %v821_v62  ;;  %v875_v24 = vld [vmem:[%s2243_s7 + $0x180] sm:$0xff]  ;;  %v876_v55 = vld [vmem:[%s2243_s7 + $0x188] sm:$0xff]  ;;  %v877_v7 = vld [vmem:[%s2243_s7 + $0x190] sm:$0xff] }
  0xd3   : > { %v2376_v36 = vmul.f32 %v853_v23, %v821_v62  ;;  %v2378_v13 = vmul.f32 %v854_v11, %v821_v62  ;;  %v2380_v14 = vmul.f32 %v855_v35, %v821_v62  ;;  %v2382_v52 = vmul.f32 %v856_v49, %v821_v62  ;;  %v878_v35 = vld [vmem:[%s2243_s7 + $0x198] sm:$0xff]  ;;  %v879_v49 = vld [vmem:[%s2243_s7 + $0x1a0] sm:$0xff] }
  0xd4   : > { %v2387_v39 = vmul.f32 %v857_v28, %v821_v62  ;;  %v2389_v25 = vmul.f32 %v858_v54, %v821_v62  ;;  %v2391_v9 = vmul.f32 %v859_v8, %v821_v62  ;;  %v2393_v31 = vmul.f32 %v860_v57, %v821_v62  ;;  %v880_v28 = vld [vmem:[%s2243_s7 + $0x1a8] sm:$0xff] }
  0xd5   : > { %v2398_v12 = vmul.f32 %v861_v60, %v821_v62  ;;  %v2400_v23 = vmul.f32 %v862_v61, %v821_v62  ;;  %v2402_v11 = vmul.f32 %v863_v47, %v821_v62  ;;  %v2404_v40 = vmul.f32 %v864_v6, %v821_v62  ;;  %v881_v61 = vld [vmem:[%s2243_s7 + $0x1b0] sm:$0xff]  ;;  %v882_v47 = vld [vmem:[%s2243_s7 + $0x1b8] sm:$0xff]  ;;  %v883_v6 = vld [vmem:[%s2243_s7 + $0x1c0] sm:$0xff] }
  0xd6   : > { %3047 = vst [vmem:[#allocation13_spill] sm:$0xff] %v2393_v31  ;;  %v2409_v54 = vmul.f32 %v865_v34, %v821_v62  ;;  %v2411_v8 = vmul.f32 %v866_v41, %v821_v62  ;;  %v2413_v57 = vmul.f32 %v867_v59, %v821_v62  ;;  %v2415_v60 = vmul.f32 %v868_v22, %v821_v62  ;;  %v884_v41 = vld [vmem:[%s2243_s7 + $0x1c8] sm:$0xff]  ;;  %v885_v59 = vld [vmem:[%s2243_s7 + $0x1d0] sm:$0xff]  ;;  %v886_v22 = vld [vmem:[%s2243_s7 + $0x1d8] sm:$0xff] }
  0xd7   : > { %3048 = vst [vmem:[#allocation14_spill] sm:$0xff] %v2398_v12  ;;  %v2420_v3 = vmul.f32 %v869_v10, %v821_v62  ;;  %v2422_v27 = vmul.f32 %v870_v1, %v821_v62  ;;  %v2428_v34 = vmul.f32 %v874_v63, %v2264_v18  ;;  %v2437_v10 = vmul.f32 %v876_v55, %v2264_v18  ;;  %v888_v63 = vld [vmem:[%s2243_s7 + $0x1e8] sm:$0xff] }
  0xd8   : > { %3049 = vst [vmem:[#allocation15_spill] sm:$0xff] %v2400_v23  ;;  %v2440_v62 = vmul.f32 %v877_v7, %v2264_v18  ;;  %v2443_v1 = vmul.f32 %v878_v35, %v2264_v18  ;;  %v2455_v55 = vmul.f32 %v881_v61, %v2264_v18  ;;  %v2458_v7 = vmul.f32 %v882_v47, %v2264_v18  ;;  %v890_v35 = vld [vmem:[%s2243_s7 + $0x1f8] sm:$0xff]  ;;  %v952_v31 = vld [vmem:[%s2243_s7 + $0x3e8] sm:$0xff] }
  0xd9   : > { %3050 = vst [vmem:[#allocation16_spill] sm:$0xff] %v2402_v11  ;;  %v2473_v61 = vmul.f32 %v886_v22, %v2264_v18 }
  0xda   : > { %3051 = vst [vmem:[#allocation17_spill] sm:$0xff] %v2404_v40  ;;  %v2479_v40 = vmul.f32 %v887_v2, %v2264_v18  ;;  %v2497_v2 = vmul.f32 %v892_v44, %v2264_v18  ;;  %v902_v44 = vld [vmem:[%s2243_s7 + $0x258] sm:$0xff] }
  0xdb   : > { %3052 = vst [vmem:[#allocation18_spill] sm:$0xff] %v2409_v54  ;;  %v724_v47 = vpop.xlane.xlu1 %723  ;;  %v894_v54 = vld [vmem:[%s2243_s7 + $0x218] sm:$0xff] }
  0xdc   : > { %3053 = vst [vmem:[#allocation19_spill] sm:$0xff] %v2411_v8  ;;  %v2464_v8 = vmul.f32 %v883_v6, %v2264_v18  ;;  %v2482_v6 = vmul.f32 %v888_v63, %v2264_v18  ;;  %v823_v22 = vmul.f32 0.25, %v724_v47  ;;  %v899_v63 = vld [vmem:[%s2243_s7 + $0x240] sm:$0xff]  ;;  %v1148_v47 = vadd.f32 %v2367_v19, %v2273_v37 }
  0xdd   : > { %3054 = vst [vmem:[#allocation20_spill] sm:$0xff] %v2413_v57  ;;  %v891_v57 = vld [vmem:[%s2243_s7 + $0x200] sm:$0xff] }
  0xde   : > { %3055 = vst [vmem:[#allocation21_spill] sm:$0xff] %v2415_v60  ;;  %v2434_v60 = vmul.f32 %v875_v24, %v2264_v18  ;;  %v2452_v24 = vmul.f32 %v880_v28, %v2264_v18  ;;  %v2470_v28 = vmul.f32 %v885_v59, %v2264_v18  ;;  %v2488_v59 = vmul.f32 %v890_v35, %v2264_v18  ;;  %v900_v35 = vld [vmem:[%s2243_s7 + $0x248] sm:$0xff] }
  0xdf   : > { %3056 = vst [vmem:[#allocation22_spill] sm:$0xff] %v2420_v3  ;;  %v2449_v3 = vmul.f32 %v879_v49, %v2264_v18  ;;  %v2467_v49 = vmul.f32 %v884_v41, %v2264_v18  ;;  %v2494_v11 = vmul.f32 %v891_v57, %v2264_v18  ;;  %v904_v57 = vld [vmem:[%s2243_s7 + $0x268] sm:$0xff]  ;;  %v2521_v37 = vmul.f32 %v894_v54, %v823_v22  ;;  %v909_v54 = vld [vmem:[%s2243_s7 + $0x290] sm:$0xff] }
  0xe0   : > { %3057 = vst [vmem:[#allocation23_spill] sm:$0xff] %v2422_v27  ;;  %v889_v27 = vld [vmem:[%s2243_s7 + $0x1f0] sm:$0xff]  ;;  %v2523_v19 = vmul.f32 %v895_v56, %v823_v22  ;;  %v908_v56 = vld [vmem:[%s2243_s7 + $0x288] sm:$0xff]  ;;  %v2563_v51 = vmul.f32 %v909_v54, %v823_v22 }
  0xe1   : > { %3058 = vst [vmem:[#allocation24_spill] sm:$0xff] %v2458_v7  ;;  %v2485_v41 = vmul.f32 %v889_v27, %v2264_v18  ;;  %v1135_v27 = vadd.f32 %v2365_v45, %v2270_v30  ;;  %v2512_v18 = vadd.f32 %v2371_v17, %v2283_v42  ;;  %v2516_v30 = vadd.f32 %v2376_v36, %v2286_v5  ;;  %v903_v45 = vld [vmem:[%s2243_s7 + $0x260] sm:$0xff]  ;;  %v905_v42 = vld [vmem:[%s2243_s7 + $0x270] sm:$0xff] }
  0xe2   : > { %3059 = vst [vmem:[#allocation25_spill] sm:$0xff] %v2464_v8  ;;  %v907_v17 = vld [vmem:[%s2243_s7 + $0x280] sm:$0xff]  ;;  %v2530_v5 = vmul.f32 %v897_v58, %v823_v22  ;;  %v2545_v20 = vmul.f32 %v903_v45, %v823_v22  ;;  %v2547_v58 = vmul.f32 %v904_v57, %v823_v22  ;;  %v916_v57 = vld [vmem:[%s2243_s7 + $0x2c8] sm:$0xff] }
  0xe3   : > { %3060 = vst [vmem:[#allocation26_spill] sm:$0xff] %v2467_v49  ;;  %v2552_v49 = vmul.f32 %v905_v42, %v823_v22  ;;  %v2556_v23 = vmul.f32 %v907_v17, %v823_v22  ;;  %v915_v45 = vld [vmem:[%s2243_s7 + $0x2c0] sm:$0xff]  ;;  %v918_v17 = vld [vmem:[%s2243_s7 + $0x2d8] sm:$0xff]  ;;  %v1070_v54 = vmul.f32 %v916_v57, %v2321_v32  ;;  %v925_v57 = vld [vmem:[%s2243_s7 + $0x310] sm:$0xff] }
  0xe4   : > { %3061 = vst [vmem:[#allocation27_spill] sm:$0xff] %v2470_v28  ;;  %v898_v28 = vld [vmem:[%s2243_s7 + $0x238] sm:$0xff] }
  0xe5   : > { %3062 = vst [vmem:[#allocation28_spill] sm:$0xff] %v2473_v61  ;;  %v896_v61 = vld [vmem:[%s2243_s7 + $0x228] sm:$0xff]  ;;  %v2532_v36 = vmul.f32 %v898_v28, %v823_v22  ;;  %v911_v28 = vld [vmem:[%s2243_s7 + $0x2a0] sm:$0xff] }
  0xe6   : > { %3063 = vst [vmem:[#allocation29_spill] sm:$0xff] %v2479_v40  ;;  %v2543_v40 = vmul.f32 %v902_v44, %v823_v22  ;;  %v914_v44 = vld [vmem:[%s2243_s7 + $0x2b8] sm:$0xff]  ;;  %v2567_v12 = vmul.f32 %v911_v28, %v823_v22  ;;  %v921_v28 = vld [vmem:[%s2243_s7 + $0x2f0] sm:$0xff] }
  0xe7   : > { %3064 = vst [vmem:[#allocation30_spill] sm:$0xff] %v2482_v6 }
  0xe8   : > { %3065 = vst [vmem:[#allocation31_spill] sm:$0xff] %v2485_v41  ;;  %v2508_v41 = vadd.f32 %v2369_v16, %v2280_v38  ;;  %v2525_v38 = vmul.f32 %v896_v61, %v823_v22  ;;  %v906_v16 = vld [vmem:[%s2243_s7 + $0x278] sm:$0xff] }
  0xe9   : > { %3066 = vst [vmem:[#allocation32_spill] sm:$0xff] %v2488_v59  ;;  %v901_v59 = vld [vmem:[%s2243_s7 + $0x250] sm:$0xff]  ;;  %v910_v61 = vld [vmem:[%s2243_s7 + $0x298] sm:$0xff]  ;;  %v2554_v8 = vmul.f32 %v906_v16, %v823_v22 }
  0xea   : > { %3067 = vst [vmem:[#allocation33_spill] sm:$0xff] %v2494_v11  ;;  %v2534_v11 = vmul.f32 %v899_v63, %v823_v22  ;;  %v2541_v6 = vmul.f32 %v901_v59, %v823_v22  ;;  %v912_v63 = vld [vmem:[%s2243_s7 + $0x2a8] sm:$0xff]  ;;  %v2558_v59 = vmul.f32 %v908_v56, %v823_v22  ;;  %v917_v16 = vld [vmem:[%s2243_s7 + $0x2d0] sm:$0xff]  ;;  %v919_v56 = vld [vmem:[%s2243_s7 + $0x2e0] sm:$0xff] }
  0xeb   : > { %3068 = vst [vmem:[#allocation34_spill] sm:$0xff] %v2497_v2  ;;  %v1047_v2 = vmul.f32 %v893_v33, %v823_v22  ;;  %v2536_v33 = vmul.f32 %v900_v35, %v823_v22  ;;  %v913_v35 = vld [vmem:[%s2243_s7 + $0x2b0] sm:$0xff]  ;;  %v2569_v42 = vmul.f32 %v912_v63, %v823_v22  ;;  %v922_v63 = vld [vmem:[%s2243_s7 + $0x2f8] sm:$0xff] }
  0xec   : > { %3069 = vst [vmem:[#allocation35_spill] sm:$0xff] %v2545_v20 }
  0xed   : > { %3070 = vst [vmem:[#allocation36_spill] sm:$0xff] %v2547_v58  ;;  %v2565_v58 = vmul.f32 %v910_v61, %v823_v22  ;;  %v920_v61 = vld [vmem:[%s2243_s7 + $0x2e8] sm:$0xff] }
  0xee   : > { %3071 = vst [vmem:[#allocation37_spill] sm:$0xff] %v2552_v49  ;;  %v930_v49 = vld [vmem:[%s2243_s7 + $0x338] sm:$0xff] }
  0xef   : > { %3072 = vst [vmem:[#allocation38_spill] sm:$0xff] %v2554_v8  ;;  %v1069_v8 = vmul.f32 %v915_v45, %v2321_v32  ;;  %v924_v45 = vld [vmem:[%s2243_s7 + $0x308] sm:$0xff] }
  0xf0   : > { %3073 = vst [vmem:[#allocation39_spill] sm:$0xff] %v2556_v23  ;;  %v2576_v23 = vmul.f32 %v914_v44, %v823_v22  ;;  %v923_v44 = vld [vmem:[%s2243_s7 + $0x300] sm:$0xff] }
  0xf1   : > { %3074 = vst [vmem:[#allocation40_spill] sm:$0xff] %v2558_v59  ;;  %v2574_v59 = vmul.f32 %v913_v35, %v823_v22  ;;  %v2590_v35 = vmul.f32 %v919_v56, %v2321_v32  ;;  %v1136_v22 = vadd.f32 %v1135_v27, %v2357_v0  ;;  %v1149_v56 = vadd.f32 %v1148_v47, %v2360_v29  ;;  %v927_v0 = vld [vmem:[%s2243_s7 + $0x320] sm:$0xff]  ;;  %v928_v27 = vld [vmem:[%s2243_s7 + $0x328] sm:$0xff] }
  0xf2   : > { %3075 = vst [vmem:[#allocation41_spill] sm:$0xff] %v2563_v51  ;;  %v931_v29 = vld [vmem:[%s2243_s7 + $0x340] sm:$0xff]  ;;  %v2625_v53 = vmul.f32 %v927_v0, %v2321_v32 }
  0xf3   : > { %3076 = vst [vmem:[#allocation42_spill] sm:$0xff] %v2565_v58  ;;  %v2610_v58 = vmul.f32 %v923_v44, %v2321_v32  ;;  %v1137_v51 = vadd.f32 %v1136_v22, %v1047_v2  ;;  %v2628_v44 = vmul.f32 %v928_v27, %v2321_v32  ;;  %v932_v2 = vld [vmem:[%s2243_s7 + $0x348] sm:$0xff]  ;;  %v933_v22 = vld [vmem:[%s2243_s7 + $0x350] sm:$0xff]  ;;  %v2641_v0 = vmul.f32 %v931_v29, %v2321_v32  ;;  %v938_v29 = vld [vmem:[%s2243_s7 + $0x378] sm:$0xff] }
  0xf4   : > { %3077 = vst [vmem:[#allocation43_spill] sm:$0xff] %v2567_v12  ;;  %v2587_v12 = vmul.f32 %v918_v17, %v2321_v32  ;;  %v2603_v17 = vmul.f32 %v922_v63, %v2321_v32  ;;  %v929_v63 = vld [vmem:[%s2243_s7 + $0x330] sm:$0xff] }
  0xf5   : > { %3078 = vst [vmem:[#allocation44_spill] sm:$0xff] %v2569_v42  ;;  %v2584_v42 = vmul.f32 %v917_v16, %v2321_v32  ;;  %v2600_v16 = vmul.f32 %v921_v28, %v2321_v32  ;;  %v2616_v28 = vmul.f32 %v925_v57, %v2321_v32  ;;  %v772_v57 = vpop.xlane.xlu2 %771  ;;  %v2635_v7 = vmul.f32 %v929_v63, %v2321_v32 }
  0xf6   : > { %3079 = vst [vmem:[#allocation45_spill] sm:$0xff] %v2574_v59  ;;  %v926_v59 = vld [vmem:[%s2243_s7 + $0x318] sm:$0xff]  ;;  %v1138_v27 = vadd.f32 %v1137_v51, %v1069_v8  ;;  %v2650_v63 = vmul.f32 %v933_v22, %v2321_v32  ;;  %v939_v51 = vld [vmem:[%s2243_s7 + $0x380] sm:$0xff]  ;;  %v940_v8 = vld [vmem:[%s2243_s7 + $0x388] sm:$0xff]  ;;  %v1162_v22 = vadd.f32 %v2508_v41, %v2425_v21 }
  0xf7   : > { %3080 = vst [vmem:[#allocation46_spill] sm:$0xff] %v2576_v23  ;;  %v2597_v23 = vmul.f32 %v920_v61, %v2321_v32  ;;  %v2613_v61 = vmul.f32 %v924_v45, %v2321_v32  ;;  %v2622_v47 = vmul.f32 %v926_v59, %v2321_v32  ;;  %v1150_v45 = vadd.f32 %v1149_v56, %v2521_v37  ;;  %v935_v56 = vld [vmem:[%s2243_s7 + $0x360] sm:$0xff] }
  0xf8   : > { %3081 = vst [vmem:[#allocation47_spill] sm:$0xff] %v2616_v28  ;;  %v934_v28 = vld [vmem:[%s2243_s7 + $0x358] sm:$0xff]  ;;  %v2638_v59 = vmul.f32 %v930_v49, %v2321_v32  ;;  %v825_v37 = vmul.f32 0.25, %v772_v57  ;;  %v2659_v57 = vmul.f32 %v935_v56, %v2321_v32  ;;  %v944_v56 = vld [vmem:[%s2243_s7 + $0x3a8] sm:$0xff]  ;;  %v1163_v41 = vadd.f32 %v1162_v22, %v2523_v19 }
  0xf9   : > { %3082 = vst [vmem:[#allocation48_spill] sm:$0xff] %v2622_v47  ;;  %v2647_v47 = vmul.f32 %v932_v2, %v2321_v32  ;;  %v2653_v49 = vmul.f32 %v934_v28, %v2321_v32  ;;  %v1151_v2 = vadd.f32 %v1150_v45, %v1070_v54  ;;  %v942_v28 = vld [vmem:[%s2243_s7 + $0x398] sm:$0xff] }
  0xfa   : > { %3083 = vst [vmem:[#allocation49_spill] sm:$0xff] %v2625_v53  ;;  %v937_v53 = vld [vmem:[%s2243_s7 + $0x370] sm:$0xff]  ;;  %v2669_v20 = vmul.f32 %v940_v8, %v825_v37  ;;  %v946_v54 = vld [vmem:[%s2243_s7 + $0x3b8] sm:$0xff]  ;;  %v2676_v45 = vmul.f32 %v942_v28, %v825_v37  ;;  %v2684_v8 = vmul.f32 %v944_v56, %v825_v37  ;;  %v951_v28 = vld [vmem:[%s2243_s7 + $0x3e0] sm:$0xff] }
  0xfb   : > { %3084 = vst [vmem:[#allocation50_spill] sm:$0xff] %v2628_v44  ;;  %v936_v44 = vld [vmem:[%s2243_s7 + $0x368] sm:$0xff] }
  0xfc   : > { %3085 = vst [vmem:[#allocation51_spill] sm:$0xff] %v2635_v7  ;;  %v1093_v7 = vmul.f32 %v939_v51, %v825_v37  ;;  %v949_v51 = vld [vmem:[%s2243_s7 + $0x3d0] sm:$0xff] }
  0xfd   : > { %3086 = vst [vmem:[#allocation52_spill] sm:$0xff] %v2638_v59  ;;  %v1092_v59 = vmul.f32 %v938_v29, %v825_v37  ;;  %v948_v29 = vld [vmem:[%s2243_s7 + $0x3c8] sm:$0xff]  ;;  %v2699_v48 = vmul.f32 %v949_v51, %v825_v37  ;;  %v958_v51 = vld [vmem:[%s2243_s7 + $0x418] sm:$0xff] }
  0xfe   : > { %3087 = vst [vmem:[#allocation53_spill] sm:$0xff] %v2641_v0  ;;  %v2662_v0 = vmul.f32 %v936_v44, %v2321_v32  ;;  %v945_v32 = vld [vmem:[%s2243_s7 + $0x3b0] sm:$0xff]  ;;  %v2697_v22 = vmul.f32 %v948_v29, %v825_v37  ;;  %v956_v29 = vld [vmem:[%s2243_s7 + $0x408] sm:$0xff] }
  0xff   : > { %3088 = vst [vmem:[#allocation54_spill] sm:$0xff] %v2647_v47  ;;  %v1091_v47 = vmul.f32 %v937_v53, %v825_v37  ;;  %v947_v53 = vld [vmem:[%s2243_s7 + $0x3c0] sm:$0xff]  ;;  %v2701_v56 = vadd.f32 %v1151_v2, %v1092_v59 }
 0x100   : > { %3089 = vst [vmem:[#allocation55_spill] sm:$0xff] %v2650_v63  ;;  %v941_v63 = vld [vmem:[%s2243_s7 + $0x390] sm:$0xff]  ;;  %v2695_v19 = vmul.f32 %v947_v53, %v825_v37  ;;  %v1164_v53 = vadd.f32 %v1163_v41, %v2584_v42  ;;  %v2728_v42 = vmul.f32 %v958_v51, %v825_v37  ;;  %v972_v51 = vld [vmem:[%s2243_s7 + $0x488] sm:$0x3] }
 0x101   : > { %3090 = vst [vmem:[#allocation56_spill] sm:$0xff] %v2653_v49  ;;  %v943_v49 = vld [vmem:[%s2243_s7 + $0x3a0] sm:$0xff]  ;;  %v2674_v44 = vmul.f32 %v941_v63, %v825_v37  ;;  %v2690_v63 = vadd.f32 %v1138_v27, %v1091_v47  ;;  %v2708_v47 = vmul.f32 %v951_v28, %v825_v37  ;;  %v2710_v27 = vmul.f32 %v952_v31, %v825_v37 }
 0x102   : > { %3091 = vst [vmem:[#allocation57_spill] sm:$0xff] %v2659_v57  ;;  %v2678_v21 = vmul.f32 %v943_v49, %v825_v37  ;;  %v2688_v57 = vmul.f32 %v946_v54, %v825_v37  ;;  %v950_v49 = vld [vmem:[%s2243_s7 + $0x3d8] sm:$0xff]  ;;  %v955_v54 = vld [vmem:[%s2243_s7 + $0x400] sm:$0xff]  ;;  %v1175_v28 = vadd.f32 %v2512_v18, %v2428_v34  ;;  %v2730_v41 = vadd.f32 %v1164_v53, %v1093_v7 }
 0x103   : > { %3092 = vst [vmem:[#allocation58_spill] sm:$0xff] %v2662_v0  ;;  %v2686_v0 = vmul.f32 %v945_v32, %v825_v37  ;;  %v953_v32 = vld [vmem:[%s2243_s7 + $0x3f0] sm:$0xff]  ;;  %v1200_v34 = vadd.f32 %v2378_v13, %v2289_v50  ;;  %v1213_v18 = vadd.f32 %v2380_v14, %v2295_v26  ;;  %v963_v7 = vld [vmem:[%s2243_s7 + $0x440] sm:$0x3]  ;;  %v1226_v53 = vadd.f32 %v2382_v52, %v2298_v43  ;;  %v819_v26 = vpop.xlane.xlu0 %818  ;;  %v966_v14 = vld [vmem:[%s2243_s7 + $0x458] sm:$0x3] }
 0x104   : > { %3094 = vst [vmem:[#allocation60_spill] sm:$0xff] %v2688_v57  ;;  %v2706_v57 = vmul.f32 %v950_v49, %v825_v37  ;;  %v2716_v59 = vmul.f32 %v953_v32, %v825_v37  ;;  %v2720_v49 = vmul.f32 %v955_v54, %v825_v37  ;;  %v959_v32 = vld [vmem:[%s2243_s7 + $0x420] sm:$0x3]  ;;  %v1176_v54 = vadd.f32 %v1175_v28, %v2525_v38  ;;  %v965_v13 = vld [vmem:[%s2243_s7 + $0x450] sm:$0x3] }
 0x105   : > { %3093 = vst [vmem:[#allocation59_spill] sm:$0xff] %v2686_v0  ;;  %v954_v0 = vld [vmem:[%s2243_s7 + $0x3f8] sm:$0xff]  ;;  %v1239_v38 = vadd.f32 %v2387_v39, %v2301_v46  ;;  %v2753_v50 = vadd.f32 %v2391_v9, %v2310_v4  ;;  %v1201_v46 = vadd.f32 %v1200_v34, %v2437_v10  ;;  %v826_v52 = vmul.f32 0.25, %v819_v26  ;;  %v968_v4 = vld [vmem:[%s2243_s7 + $0x468] sm:$0x3] }
 0x106   : > { %3095 = vst [vmem:[#allocation61_spill] sm:$0xff] %v2697_v22  ;;  %v957_v22 = vld [vmem:[%s2243_s7 + $0x410] sm:$0xff]  ;;  %v2718_v2 = vmul.f32 %v954_v0, %v825_v37  ;;  %v971_v10 = vld [vmem:[%s2243_s7 + $0x480] sm:$0x3] }
 0x107   : > { %3096 = vst [vmem:[#allocation62_spill] sm:$0xff] %v2708_v47  ;;  %v2724_v47 = vmul.f32 %v956_v29, %v825_v37  ;;  %v2726_v31 = vmul.f32 %v957_v22, %v825_v37  ;;  %v961_v0 = vld [vmem:[%s2243_s7 + $0x430] sm:$0x3]  ;;  %v962_v37 = vld [vmem:[%s2243_s7 + $0x438] sm:$0x3]  ;;  %v1177_v29 = vadd.f32 %v1176_v54, %v2587_v12  ;;  %v2768_v9 = vadd.f32 %v1239_v38, %v2449_v3 }
 0x108   : > { %3097 = vst [vmem:[#allocation63_spill] sm:$0xff] %v2716_v59  ;;  %v960_v59 = vld [vmem:[%s2243_s7 + $0x428] sm:$0x3]  ;;  %v969_v39 = vld [vmem:[%s2243_s7 + $0x470] sm:$0x3]  ;;  %v1202_v28 = vadd.f32 %v1201_v46, %v2532_v36  ;;  %v1116_v38 = vmul.f32 %v962_v37, %v826_v52 }
 0x109   : > { %3098 = vst [vmem:[#allocation64_spill] sm:$0xff] %v2720_v49  ;;  %v1188_v49 = vadd.f32 %v2516_v30, %v2434_v60  ;;  %v964_v22 = vld [vmem:[%s2243_s7 + $0x448] sm:$0x3]  ;;  %v1252_v60 = vadd.f32 %v2389_v25, %v2304_v15  ;;  %v967_v30 = vld [vmem:[%s2243_s7 + $0x460] sm:$0x3]  ;;  %v1214_v15 = vadd.f32 %v1213_v18, %v2440_v62  ;;  %v2765_v25 = vadd.f32 %v1226_v53, %v2443_v1 }
 0x10a   : > { %3099 = vst [vmem:[#allocation65_spill] sm:$0xff] %v2726_v31  ;;  %v1178_v62 = vadd.f32 %v1177_v29, %v2669_v20  ;;  %v973_v3 = vld [vmem:[%s2243_s7 + $0x490] sm:$0x3]  ;;  %v974_v54 = vld [vmem:[%s2243_s7 + $0x498] sm:$0x3]  ;;  %v1114_v18 = vmul.f32 %v960_v59, %v826_v52  ;;  %v1115_v53 = vmul.f32 %v961_v0, %v826_v52  ;;  %v1117_v31 = vmul.f32 %v963_v7, %v826_v52 }
 0x10b   : > { %3100 = vst [vmem:[#allocation66_spill] sm:$0xff] %v2728_v42  ;;  %v1189_v43 = vadd.f32 %v1188_v49, %v2530_v5  ;;  %v2771_v12 = vadd.f32 %v1252_v60, %v2452_v24  ;;  %v970_v5 = vld [vmem:[%s2243_s7 + $0x478] sm:$0x3]  ;;  %v1215_v1 = vadd.f32 %v1214_v15, %v2534_v11  ;;  %v975_v34 = vld [vmem:[%s2243_s7 + $0x4a0] sm:$0x3]  ;;  %v1113_v24 = vmul.f32 %v959_v32, %v826_v52 }
 0x10c   : > { %v976_v60 = vld [vmem:[%s2243_s7 + $0x4a8] sm:$0x3]  ;;  %v977_v26 = vld [vmem:[%s2243_s7 + $0x4b0] sm:$0x3]  ;;  %v978_v42 = vld [vmem:[%s2243_s7 + $0x4b8] sm:$0x3]  ;;  %v1118_v20 = vmul.f32 %v964_v22, %v826_v52  ;;  %v1119_v29 = vmul.f32 %v965_v13, %v826_v52  ;;  %v2790_v46 = vmul.f32 %v967_v30, %v826_v52  ;;  %v2792_v11 = vmul.f32 %v968_v4, %v826_v52 }
 0x10d   : > { %v1190_v49 = vadd.f32 %v1189_v43, %v2590_v35  ;;  %v2786_v35 = vmul.f32 %v966_v14, %v826_v52  ;;  %v979_v36 = vld [vmem:[%s2243_s7 + $0x4c0] sm:$0x3]  ;;  %v980_v43 = vld [vmem:[%s2243_s7 + $0x4c8] sm:$0x3]  ;;  %v2794_v15 = vmul.f32 %v969_v39, %v826_v52  ;;  %v2796_v32 = vmul.f32 %v970_v5, %v826_v52 }
 0x10e   : > { %v2798_v59 = vmul.f32 %v971_v10, %v826_v52  ;;  %v2800_v0 = vmul.f32 %v972_v51, %v826_v52  ;;  %v2802_v37 = vmul.f32 %v973_v3, %v826_v52  ;;  %v2804_v7 = vmul.f32 %v974_v54, %v826_v52 }
 0x10f   : > { %v2806_v22 = vmul.f32 %v975_v34, %v826_v52  ;;  %v2808_v13 = vmul.f32 %v976_v60, %v826_v52  ;;  %v2810_v14 = vmul.f32 %v977_v26, %v826_v52  ;;  %v2812_v30 = vmul.f32 %v978_v42, %v826_v52 }
 0x110   : > { %v2814_v4 = vmul.f32 %v979_v36, %v826_v52  ;;  %v2816_v39 = vmul.f32 %v980_v43, %v826_v52  ;;  %v1140_v5 = vsel %vm773_vm1, %v1113_v24, 0.0  ;;  %v1153_v10 = vsel %vm773_vm1, %v1114_v18, 0.0 }
 0x111   : > { %v1141_v51 = vadd.f32 %v1140_v5, %v2690_v63  ;;  %v1154_v3 = vadd.f32 %v1153_v10, %v2701_v56  ;;  %v1166_v54 = vsel %vm773_vm1, %v1115_v53, 0.0  ;;  %v1179_v34 = vsel %vm773_vm1, %v1116_v38, 0.0 }
 0x112   : > { %v1167_v60 = vadd.f32 %v1166_v54, %v2730_v41  ;;  %v1180_v42 = vadd.f32 %v1179_v34, %v1178_v62  ;;  %v1191_v26 = vadd.f32 %v1190_v49, %v2674_v44  ;;  %v1192_v52 = vsel %vm773_vm1, %v1117_v31, 0.0 }
 0x113   : > { %v1142_v36 = vrot.slane %v1141_v51, 4  ;;  %v1155_v43 = vrot.slane %v1154_v3, 4  ;;  %v1203_v24 = vadd.f32 %v1202_v28, %v2597_v23  ;;  %v1205_v18 = vsel %vm773_vm1, %v1118_v20, 0.0 }
 0x114   : > { %v1168_v63 = vrot.slane %v1167_v60, 4  ;;  %v1181_v5 = vrot.slane %v1180_v42, 4  ;;  %v1193_v56 = vadd.f32 %v1192_v52, %v1191_v26  ;;  %v1216_v53 = vadd.f32 %v1215_v1, %v2600_v16 }
 0x115   : > { %v1143_v10 = vadd.f32 %v1142_v36, %v1141_v51  ;;  %v1156_v38 = vadd.f32 %v1155_v43, %v1154_v3  ;;  %v1204_v41 = vadd.f32 %v1203_v24, %v2676_v45  ;;  %v1218_v62 = vsel %vm773_vm1, %v1119_v29, 0.0 }
 0x116   : > { %v1169_v44 = vadd.f32 %v1168_v63, %v1167_v60  ;;  %v1182_v49 = vadd.f32 %v1181_v5, %v1180_v42  ;;  %v1194_v31 = vrot.slane %v1193_v56, 4  ;;  %v1217_v54 = vadd.f32 %v1216_v53, %v2678_v21 }
 0x117   : > { %v1144_v34 = vrot.slane %v1143_v10, 2  ;;  %v1157_v23 = vrot.slane %v1156_v38, 2  ;;  %v1206_v28 = vadd.f32 %v1205_v18, %v1204_v41  ;;  %v1228_v20 = vadd.f32 %v2765_v25, %v2536_v33 }
 0x118   : > { %v1170_v26 = vrot.slane %v1169_v44, 2  ;;  %v1183_v52 = vrot.slane %v1182_v49, 2  ;;  %v1195_v16 = vadd.f32 %v1194_v31, %v1193_v56  ;;  %v1219_v1 = vadd.f32 %v1218_v62, %v1217_v54 }
 0x119   : > { %v1145_v51 = vadd.f32 %v1144_v34, %v1143_v10  ;;  %v1158_v3 = vadd.f32 %v1157_v23, %v1156_v38  ;;  %v1207_v45 = vrot.slane %v1206_v28, 4  ;;  %v1229_v29 = vadd.f32 %v1228_v20, %v2603_v17 }
 0x11a   : > { %v1171_v60 = vadd.f32 %v1170_v26, %v1169_v44  ;;  %v1184_v42 = vadd.f32 %v1183_v52, %v1182_v49  ;;  %v1196_v36 = vrot.slane %v1195_v16, 2  ;;  %v1220_v43 = vrot.slane %v1219_v1, 4 }
 0x11b   : > { %v1146_v21 = vrot.slane %v1145_v51, 1  ;;  %v1159_v24 = vrot.slane %v1158_v3, 1  ;;  %v1208_v63 = vadd.f32 %v1207_v45, %v1206_v28  ;;  %v1230_v18 = vadd.f32 %v1229_v29, %v2684_v8 }
 0x11c   : > { %v1172_v5 = vrot.slane %v1171_v60, 1  ;;  %v1185_v33 = vrot.slane %v1184_v42, 1  ;;  %v1197_v25 = vadd.f32 %v1196_v36, %v1195_v16  ;;  %v1221_v53 = vadd.f32 %v1220_v43, %v1219_v1  ;;  %v3105_v36 = vld [vmem:[#allocation60_spill] sm:$0xff] }
 0x11d   : > { %v2837_v56 = vadd.f32 %v1146_v21, %v1145_v51  ;;  %v2839_v10 = vadd.f32 %v1159_v24, %v1158_v3  ;;  %v1209_v38 = vrot.slane %v1208_v63, 2  ;;  %v1231_v17 = vsel %vm773_vm1, %v2786_v35, 0.0  ;;  %v3101_v51 = vld [vmem:[#allocation2_spill] sm:$0xff]  ;;  %v3102_v3 = vld [vmem:[#allocation13_spill] sm:$0xff]  ;;  %v3107_v24 = vld [vmem:[#allocation47_spill] sm:$0xff] }
 0x11e   : > { %v2843_v41 = vadd.f32 %v1172_v5, %v1171_v60  ;;  %v2845_v62 = vadd.f32 %v1185_v33, %v1184_v42  ;;  %v1198_v44 = vrot.slane %v1197_v25, 1  ;;  %v1222_v49 = vrot.slane %v1221_v53, 2  ;;  %v3104_v60 = vld [vmem:[#allocation35_spill] sm:$0xff]  ;;  %v3109_v5 = vld [vmem:[#allocation14_spill] sm:$0xff] }
 0x11f   : > { %v1210_v31 = vadd.f32 %v1209_v38, %v1208_v63  ;;  %v1232_v8 = vadd.f32 %v1231_v17, %v1230_v18  ;;  %v1241_v54 = vadd.f32 %v2768_v9, %v2541_v6  ;;  %v1244_v34 = vsel %vm773_vm1, %v2790_v46, 0.0  ;;  %v3108_v18 = vld [vmem:[#allocation3_spill] sm:$0xff] }
 0x120   : > { %v2851_v23 = vadd.f32 %v1198_v44, %v1197_v25  ;;  %v1223_v28 = vadd.f32 %v1222_v49, %v1221_v53  ;;  %v1254_v35 = vadd.f32 %v2771_v12, %v2543_v40  ;;  %v1257_v20 = vsel %vm773_vm1, %v2792_v11, 0.0  ;;  %v3103_v11 = vld [vmem:[#allocation59_spill] sm:$0xff]  ;;  %v3110_v53 = vld [vmem:[#allocation36_spill] sm:$0xff] }
 0x121   : > { %v1211_v26 = vrot.slane %v1210_v31, 1  ;;  %v1233_v52 = vrot.slane %v1232_v8, 4  ;;  %v1242_v16 = vadd.f32 %v1241_v54, %v2610_v58  ;;  %v1266_v1 = vadd.f32 %v2753_v50, %v2455_v55  ;;  %v3106_v50 = vld [vmem:[#allocation24_spill] sm:$0xff]  ;;  %v3112_v49 = vld [vmem:[#allocation15_spill] sm:$0xff] }
 0x122   : > { %v1224_v6 = vrot.slane %v1223_v28, 1  ;;  %v1255_v9 = vadd.f32 %v1254_v35, %v2613_v61  ;;  %v1270_v46 = vsel %vm773_vm1, %v2794_v15, 0.0  ;;  %v1278_v45 = vadd.f32 %v3102_v3, %v3101_v51  ;;  %v3111_v44 = vld [vmem:[#allocation4_spill] sm:$0xff]  ;;  %v3116_v51 = vld [vmem:[#allocation37_spill] sm:$0xff] }
 0x123   : > { %v2865_v40 = vadd.f32 %v1211_v26, %v1210_v31  ;;  %v1234_v12 = vadd.f32 %v1233_v52, %v1232_v8  ;;  %v1243_v29 = vadd.f32 %v1242_v16, %v3103_v11  ;;  %v1267_v42 = vadd.f32 %v1266_v1, %v3104_v60  ;;  %v3114_v26 = vld [vmem:[#allocation48_spill] sm:$0xff]  ;;  %v3115_v16 = vld [vmem:[#allocation26_spill] sm:$0xff]  ;;  %v3119_v60 = vld [vmem:[#allocation5_spill] sm:$0xff] }
 0x124   : > { %v2869_v58 = vadd.f32 %v1224_v6, %v1223_v28  ;;  %v1256_v55 = vadd.f32 %v1255_v9, %v3105_v36  ;;  %v1279_v43 = vadd.f32 %v1278_v45, %v3106_v50  ;;  %v1283_v61 = vsel %vm773_vm1, %v2796_v32, 0.0  ;;  %v3113_v28 = vld [vmem:[#allocation25_spill] sm:$0xff] }
 0x125   : > { %v1235_v15 = vrot.slane %v1234_v12, 2  ;;  %v1245_v21 = vadd.f32 %v1244_v34, %v1243_v29  ;;  %v1268_v63 = vadd.f32 %v1267_v42, %v3107_v24  ;;  %v1291_v33 = vadd.f32 %v3109_v5, %v3108_v18  ;;  %v3118_v29 = vld [vmem:[#allocation38_spill] sm:$0xff]  ;;  %v3120_v42 = vld [vmem:[#allocation16_spill] sm:$0xff]  ;;  %v3123_v18 = vld [vmem:[#allocation27_spill] sm:$0xff] }
 0x126   : > { %v1258_v25 = vadd.f32 %v1257_v20, %v1256_v55  ;;  %v1280_v38 = vadd.f32 %v1279_v43, %v3110_v53  ;;  %v1296_v17 = vsel %vm773_vm1, %v2798_v59, 0.0  ;;  %v1304_v31 = vadd.f32 %v3112_v49, %v3111_v44 }
 0x127   : > { %v1236_v8 = vadd.f32 %v1235_v15, %v1234_v12  ;;  %v1246_v54 = vrot.slane %v1245_v21, 4  ;;  %v1269_v32 = vadd.f32 %v1268_v63, %v2695_v19  ;;  %v1292_v34 = vadd.f32 %v1291_v33, %v3113_v28  ;;  %v3117_v12 = vld [vmem:[#allocation61_spill] sm:$0xff] }
 0x128   : > { %v1259_v35 = vrot.slane %v1258_v25, 4  ;;  %v1281_v52 = vadd.f32 %v1280_v38, %v3114_v26  ;;  %v1305_v1 = vadd.f32 %v1304_v31, %v3115_v16  ;;  %v1309_v20 = vsel %vm773_vm1, %v2800_v0, 0.0  ;;  %v3121_v15 = vld [vmem:[#allocation49_spill] sm:$0xff] }
 0x129   : > { %v1237_v6 = vrot.slane %v1236_v8, 1  ;;  %v1247_v9 = vadd.f32 %v1246_v54, %v1245_v21  ;;  %v1271_v59 = vadd.f32 %v1270_v46, %v1269_v32  ;;  %v1293_v3 = vadd.f32 %v1292_v34, %v3116_v51  ;;  %v3122_v21 = vld [vmem:[#allocation50_spill] sm:$0xff]  ;;  %v3128_v51 = vld [vmem:[#allocation28_spill] sm:$0xff] }
 0x12a   : > { %v1260_v45 = vadd.f32 %v1259_v35, %v1258_v25  ;;  %v1282_v11 = vadd.f32 %v1281_v52, %v3117_v12  ;;  %v1306_v19 = vadd.f32 %v1305_v1, %v3118_v29  ;;  %v1317_v36 = vadd.f32 %v3120_v42, %v3119_v60  ;;  %v3125_v34 = vld [vmem:[#allocation6_spill] sm:$0xff]  ;;  %v3126_v35 = vld [vmem:[#allocation17_spill] sm:$0xff]  ;;  %v3130_v60 = vld [vmem:[#allocation40_spill] sm:$0xff] }
 0x12b   : > { %v2894_v55 = vadd.f32 %v1237_v6, %v1236_v8  ;;  %v1248_v50 = vrot.slane %v1247_v9, 2  ;;  %v1272_v43 = vrot.slane %v1271_v59, 4  ;;  %v1294_v24 = vadd.f32 %v1293_v3, %v3121_v15  ;;  %v3124_v8 = vld [vmem:[#allocation39_spill] sm:$0xff] }
 0x12c   : > { %v1261_v0 = vrot.slane %v1260_v45, 2  ;;  %v1284_v63 = vadd.f32 %v1283_v61, %v1282_v11  ;;  %v1307_v46 = vadd.f32 %v1306_v19, %v3122_v21  ;;  %v1318_v5 = vadd.f32 %v1317_v36, %v3123_v18  ;;  %v3127_v6 = vld [vmem:[#allocation51_spill] sm:$0xff]  ;;  %v3129_v11 = vld [vmem:[#allocation62_spill] sm:$0xff] }
 0x12d   : > { %v1249_v33 = vadd.f32 %v1248_v50, %v1247_v9  ;;  %v1273_v25 = vadd.f32 %v1272_v43, %v1271_v59  ;;  %v1295_v53 = vadd.f32 %v1294_v24, %v2699_v48  ;;  %v1322_v38 = vsel %vm773_vm1, %v2802_v37, 0.0  ;;  %v3131_v15 = vld [vmem:[#allocation7_spill] sm:$0xff]  ;;  %v3132_v24 = vld [vmem:[#allocation18_spill] sm:$0xff] }
 0x12e   : > { %v1262_v44 = vadd.f32 %v1261_v0, %v1260_v45  ;;  %v1285_v49 = vrot.slane %v1284_v63, 4  ;;  %v1308_v31 = vadd.f32 %v1307_v46, %v2706_v57  ;;  %v1319_v54 = vadd.f32 %v1318_v5, %v3124_v8  ;;  %v3133_v46 = vld [vmem:[#allocation52_spill] sm:$0xff]  ;;  %v3136_v8 = vld [vmem:[#allocation19_spill] sm:$0xff] }
 0x12f   : > { %v1250_v32 = vrot.slane %v1249_v33, 1  ;;  %v1274_v28 = vrot.slane %v1273_v25, 2  ;;  %v1297_v61 = vadd.f32 %v1296_v17, %v1295_v53  ;;  %v1330_v26 = vadd.f32 %v3126_v35, %v3125_v34  ;;  %v3137_v35 = vld [vmem:[#allocation41_spill] sm:$0xff] }
 0x130   : > { %v1263_v52 = vrot.slane %v1262_v44, 1  ;;  %v1286_v16 = vadd.f32 %v1285_v49, %v1284_v63  ;;  %v1310_v1 = vadd.f32 %v1309_v20, %v1308_v31  ;;  %v1320_v48 = vadd.f32 %v1319_v54, %v3127_v6  ;;  %v3139_v6 = vld [vmem:[#allocation9_spill] sm:$0xff] }
 0x131   : > { %v2907_v9 = vadd.f32 %v1250_v32, %v1249_v33  ;;  %v1275_v37 = vadd.f32 %v1274_v28, %v1273_v25  ;;  %v1298_v59 = vrot.slane %v1297_v61, 4  ;;  %v1331_v3 = vadd.f32 %v1330_v26, %v3128_v51  ;;  %v3141_v51 = vld [vmem:[#allocation53_spill] sm:$0xff] }
 0x132   : > { %v2910_v57 = vadd.f32 %v1263_v52, %v1262_v44  ;;  %v1287_v45 = vrot.slane %v1286_v16, 2  ;;  %v1311_v12 = vrot.slane %v1310_v1, 4  ;;  %v1321_v17 = vadd.f32 %v1320_v48, %v3129_v11  ;;  %v3134_v44 = vld [vmem:[#allocation29_spill] sm:$0xff]  ;;  %v3140_v48 = vld [vmem:[#allocation20_spill] sm:$0xff]  ;;  %v3142_v11 = vld [vmem:[#allocation42_spill] sm:$0xff] }
 0x133   : > { %v1276_v29 = vrot.slane %v1275_v37, 1  ;;  %v1299_v19 = vadd.f32 %v1298_v59, %v1297_v61  ;;  %v1332_v42 = vadd.f32 %v1331_v3, %v3130_v60  ;;  %v1335_v20 = vsel %vm773_vm1, %v2804_v7, 0.0 }
 0x134   : > { %v1288_v36 = vadd.f32 %v1287_v45, %v1286_v16  ;;  %v1312_v50 = vadd.f32 %v1311_v12, %v1310_v1  ;;  %v1323_v43 = vadd.f32 %v1322_v38, %v1321_v17  ;;  %v1343_v0 = vadd.f32 %v3132_v24, %v3131_v15  ;;  %v3135_v38 = vld [vmem:[#allocation8_spill] sm:$0xff]  ;;  %v3138_v16 = vld [vmem:[#allocation30_spill] sm:$0xff] }
 0x135   : > { %v2918_v63 = vadd.f32 %v1276_v29, %v1275_v37  ;;  %v1300_v21 = vrot.slane %v1299_v19, 2  ;;  %v1333_v18 = vadd.f32 %v1332_v42, %v3133_v46  ;;  %v1348_v5 = vsel %vm773_vm1, %v2806_v22, 0.0  ;;  %v3143_v29 = vld [vmem:[#allocation31_spill] sm:$0xff] }
 0x136   : > { %v1289_v33 = vrot.slane %v1288_v36, 1  ;;  %v1313_v25 = vrot.slane %v1312_v50, 2  ;;  %v1324_v53 = vrot.slane %v1323_v43, 4  ;;  %v1344_v49 = vadd.f32 %v1343_v0, %v3134_v44  ;;  %v3147_v0 = vld [vmem:[#allocation54_spill] sm:$0xff]  ;;  %v3148_v46 = vld [vmem:[#allocation43_spill] sm:$0xff] }
 0x137   : > { %v1301_v7 = vadd.f32 %v1300_v21, %v1299_v19  ;;  %v1334_v31 = vadd.f32 %v1333_v18, %v2710_v27  ;;  %v1356_v54 = vadd.f32 %v3136_v8, %v3135_v38  ;;  %v1361_v32 = vsel %vm773_vm1, %v2808_v13, 0.0 }
 0x138   : > { %v2929_v28 = vadd.f32 %v1289_v33, %v1288_v36  ;;  %v1314_v61 = vadd.f32 %v1313_v25, %v1312_v50  ;;  %v1325_v34 = vadd.f32 %v1324_v53, %v1323_v43  ;;  %v1345_v22 = vadd.f32 %v1344_v49, %v3137_v35  ;;  %v3145_v50 = vld [vmem:[#allocation10_spill] sm:$0xff]  ;;  %v3146_v43 = vld [vmem:[#allocation21_spill] sm:$0xff]  ;;  %v3149_v53 = vld [vmem:[#allocation32_spill] sm:$0xff] }
 0x139   : > { %v1302_v26 = vrot.slane %v1301_v7, 1  ;;  %v1336_v52 = vadd.f32 %v1335_v20, %v1334_v31  ;;  %v1357_v1 = vadd.f32 %v1356_v54, %v3138_v16  ;;  %v1369_v37 = vadd.f32 %v3140_v48, %v3139_v6  ;;  %v3144_v20 = vld [vmem:[#allocation63_spill] sm:$0xff]  ;;  %v3155_v6 = vld [vmem:[#allocation64_spill] sm:$0xff] }
 0x13a   : > { %v1315_v27 = vrot.slane %v1314_v61, 1  ;;  %v1326_v59 = vrot.slane %v1325_v34, 2  ;;  %v1346_v3 = vadd.f32 %v1345_v22, %v3141_v51  ;;  %v1374_v13 = vsel %vm773_vm1, %v2810_v14, 0.0  ;;  %v3150_v49 = vld [vmem:[#allocation11_spill] sm:$0xff] }
 0x13b   : > { %v2938_v45 = vadd.f32 %v1302_v26, %v1301_v7  ;;  %v1337_v12 = vrot.slane %v1336_v52, 4  ;;  %v1358_v17 = vadd.f32 %v1357_v1, %v3142_v11  ;;  %v1370_v19 = vadd.f32 %v1369_v37, %v3143_v29  ;;  %v3151_v7 = vld [vmem:[#allocation22_spill] sm:$0xff]  ;;  %v3152_v54 = vld [vmem:[#allocation55_spill] sm:$0xff]  ;;  %v3153_v26 = vld [vmem:[#allocation44_spill] sm:$0xff] }
 0x13c   : > { %v2942_v60 = vadd.f32 %v1315_v27, %v1314_v61  ;;  %v1327_v42 = vadd.f32 %v1326_v59, %v1325_v34  ;;  %v1347_v36 = vadd.f32 %v1346_v3, %v3144_v20  ;;  %v1382_v15 = vadd.f32 %v3146_v43, %v3145_v50  ;;  %v3156_v37 = vld [vmem:[#allocation12_spill] sm:$0xff]  ;;  %v3158_v3 = vld [vmem:[#allocation45_spill] sm:$0xff]  ;;  %v3161_v43 = vld [vmem:[#allocation34_spill] sm:$0xff] }
 0x13d   : > { %v1338_v24 = vadd.f32 %v1337_v12, %v1336_v52  ;;  %v1359_v21 = vadd.f32 %v1358_v17, %v3147_v0  ;;  %v1371_v14 = vadd.f32 %v1370_v19, %v3148_v46  ;;  %v1387_v18 = vsel %vm773_vm1, %v2812_v30, 0.0  ;;  %v3154_v52 = vld [vmem:[#allocation33_spill] sm:$0xff]  ;;  %v3157_v59 = vld [vmem:[#allocation56_spill] sm:$0xff] }
 0x13e   : > { %v1328_v33 = vrot.slane %v1327_v42, 1  ;;  %v1349_v25 = vadd.f32 %v1348_v5, %v1347_v36  ;;  %v1383_v44 = vadd.f32 %v1382_v15, %v3149_v53  ;;  %v1395_v31 = vadd.f32 %v3151_v7, %v3150_v49  ;;  %v3160_v36 = vld [vmem:[#allocation57_spill] sm:$0xff] }
 0x13f   : > { %v1339_v38 = vrot.slane %v1338_v24, 2  ;;  %v1360_v8 = vadd.f32 %v1359_v21, %v2718_v2  ;;  %v1372_v61 = vadd.f32 %v1371_v14, %v3152_v54  ;;  %v1400_v34 = vsel %vm773_vm1, %v2814_v4, 0.0  ;;  %v3159_v4 = vld [vmem:[#allocation23_spill] sm:$0xff] }
 0x140   : > { %v2958_v35 = vadd.f32 %v1328_v33, %v1327_v42  ;;  %v1350_v22 = vrot.slane %v1349_v25, 4  ;;  %v1384_v30 = vadd.f32 %v1383_v44, %v3153_v26  ;;  %v1396_v5 = vadd.f32 %v1395_v31, %v3154_v52  ;;  %v3163_v44 = vld [vmem:[#allocation46_spill] sm:$0xff] }
 0x141   : > { %v1340_v16 = vadd.f32 %v1339_v38, %v1338_v24  ;;  %v1362_v1 = vadd.f32 %v1361_v32, %v1360_v8  ;;  %v1373_v48 = vadd.f32 %v1372_v61, %v3155_v6  ;;  %v1408_v27 = vsel %vm648_vm0, %v3156_v37, 0.0  ;;  %v3164_v31 = vld [vmem:[#allocation58_spill] sm:$0xff] }
 0x142   : > { %v1351_v2 = vadd.f32 %v1350_v22, %v1349_v25  ;;  %v1385_v51 = vadd.f32 %v1384_v30, %v3157_v59  ;;  %v1397_v12 = vadd.f32 %v1396_v5, %v3158_v3  ;;  %v1409_v11 = vsel %vm648_vm0, %v3159_v4, 0.0  ;;  %v3162_v25 = vld [vmem:[#allocation65_spill] sm:$0xff]  ;;  %v3165_v22 = vld [vmem:[#allocation66_spill] sm:$0xff] }
 0x143   : > { %v1341_v17 = vrot.slane %v1340_v16, 1  ;;  %v1363_v29 = vrot.slane %v1362_v1, 4  ;;  %v1375_v19 = vadd.f32 %v1374_v13, %v1373_v48  ;;  %v1410_v42 = vadd.f32 %v1409_v11, %v1408_v27 }
 0x144   : > { %v1352_v20 = vrot.slane %v1351_v2, 2  ;;  %v1386_v32 = vadd.f32 %v1385_v51, %v2724_v47  ;;  %v1398_v50 = vadd.f32 %v1397_v12, %v3160_v36  ;;  %v1411_v15 = vsel %vm648_vm0, %v3161_v43, 0.0 }
 0x145   : > { %v2973_v24 = vadd.f32 %v1341_v17, %v1340_v16  ;;  %v1364_v0 = vadd.f32 %v1363_v29, %v1362_v1  ;;  %v1376_v21 = vrot.slane %v1375_v19, 4  ;;  %v1412_v46 = vadd.f32 %v1411_v15, %v1410_v42 }
 0x146   : > { %v1353_v14 = vadd.f32 %v1352_v20, %v1351_v2  ;;  %v1388_v33 = vadd.f32 %v1387_v18, %v1386_v32  ;;  %v1399_v53 = vadd.f32 %v1398_v50, %v3162_v25  ;;  %v1413_v13 = vsel %vm648_vm0, %v3163_v44, 0.0 }
 0x147   : > { %v1365_v49 = vrot.slane %v1364_v0, 2  ;;  %v1377_v7 = vadd.f32 %v1376_v21, %v1375_v19  ;;  %v1414_v47 = vadd.f32 %v1413_v13, %v1412_v46  ;;  %v1415_v38 = vsel %vm648_vm0, %v3164_v31, 0.0 }
 0x148   : > { %v1354_v8 = vrot.slane %v1353_v14, 1  ;;  %v1389_v54 = vrot.slane %v1388_v33, 4  ;;  %v1401_v61 = vadd.f32 %v1400_v34, %v1399_v53  ;;  %v1417_v26 = vsel %vm648_vm0, %v3165_v22, 0.0 }
 0x149   : > { %v1366_v30 = vadd.f32 %v1365_v49, %v1364_v0  ;;  %v1378_v52 = vrot.slane %v1377_v7, 2  ;;  %v1416_v18 = vadd.f32 %v1415_v38, %v1414_v47  ;;  %v1419_v5 = vsel %vm815_vm2, %v2816_v39, 0.0 }
 0x14a   : > { %v2984_v16 = vadd.f32 %v1354_v8, %v1353_v14  ;;  %v1390_v1 = vadd.f32 %v1389_v54, %v1388_v33  ;;  %v1402_v6 = vrot.slane %v1401_v61, 4  ;;  %v1449_v48 = vrot.slane %v2839_v10, 7 }
 0x14b   : > { %v1367_v37 = vrot.slane %v1366_v30, 1  ;;  %v1379_v27 = vadd.f32 %v1378_v52, %v1377_v7  ;;  %v1418_v2 = vadd.f32 %v1417_v26, %v1416_v18  ;;  %v1450_v34 = vrot.slane %v2843_v41, 6 }
 0x14c   : > { %v1391_v59 = vrot.slane %v1390_v1, 2  ;;  %v1403_v51 = vadd.f32 %v1402_v6, %v1401_v61  ;;  %v1451_v3 = vrot.slane %v2845_v62, 5  ;;  %v1452_v12 = vrot.slane %v2851_v23, 4 }
 0x14d   : > { %v1368_v4 = vadd.f32 %v1367_v37, %v1366_v30  ;;  %v1380_v11 = vrot.slane %v1379_v27, 1  ;;  %v1420_v39 = vadd.f32 %v1419_v5, %v1418_v2  ;;  %v1453_v17 = vrot.slane %v2865_v40, 3 }
 0x14e   : > { %v1392_v29 = vadd.f32 %v1391_v59, %v1390_v1  ;;  %v1404_v19 = vrot.slane %v1403_v51, 2  ;;  %v1454_v10 = vrot.slane %v2869_v58, 2  ;;  %v1455_v42 = vrot.slane %v2894_v55, 1 }
 0x14f   : > { %v1381_v20 = vadd.f32 %v1380_v11, %v1379_v27  ;;  %v1421_v32 = vrot.slane %v1420_v39, 4  ;;  %v1456_v41 = vrot.slane %v2910_v57, 7  ;;  %v1457_v36 = vrot.slane %v2918_v63, 6 }
 0x150   : > { %v1393_v62 = vrot.slane %v1392_v29, 1  ;;  %v1405_v50 = vadd.f32 %v1404_v19, %v1403_v51  ;;  %v1458_v23 = vrot.slane %v2929_v28, 5  ;;  %v1459_v43 = vrot.slane %v2938_v45, 4 }
 0x151   : > { %v1422_v15 = vadd.f32 %v1421_v32, %v1420_v39  ;;  %v1460_v40 = vrot.slane %v2942_v60, 3  ;;  %v1461_v0 = vrot.slane %v2958_v35, 2  ;;  %v1462_v58 = vrot.slane %v2973_v24, 1 }
 0x152   : > { %v1394_v55 = vadd.f32 %v1393_v62, %v1392_v29  ;;  %v1406_v21 = vrot.slane %v1405_v50, 1  ;;  %v1463_v46 = vrot.slane %v1368_v4, 7  ;;  %v1464_v57 = vrot.slane %v1381_v20, 6 }
 0x153   : > { %v1423_v14 = vrot.slane %v1422_v15, 2  ;;  %v1469_v45 = vsel %vm1468_vm3, %v2837_v56, %v1449_v48  ;;  %v1471_v60 = vsel %vm1470_vm4, %v1450_v34, %v1451_v3  ;;  %v1474_v24 = vsel %vm1473_vm5, %v1452_v12, %v1453_v17 }
 0x154   : > { %v1407_v63 = vadd.f32 %v1406_v21, %v1405_v50  ;;  %v1465_v28 = vrot.slane %v1394_v55, 5  ;;  %v1472_v35 = vsel %vm773_vm1, %v1469_v45, %v1471_v60  ;;  %v1476_v53 = vsel %vm1475_vm6, %v1454_v10, %v1455_v42 }
 0x155   : > { %v1424_v33 = vadd.f32 %v1423_v14, %v1422_v15  ;;  %v1478_v13 = vsel %vm1477_vm7, %v1474_v24, %v1476_v53  ;;  %v1481_v56 = vsel %vm1468_vm3, %v2907_v9, %v1456_v41  ;;  %v1482_v49 = vsel %vm1470_vm4, %v1457_v36, %v1458_v23 }
 0x156   : > { %v1466_v25 = vrot.slane %v1407_v63, 4  ;;  %v1480_v7 = vsel %vm1479_vm8, %v1472_v35, %v1478_v13  ;;  %v1483_v47 = vsel %vm773_vm1, %v1481_v56, %v1482_v49  ;;  %v1484_v31 = vsel %vm1473_vm5, %v1459_v43, %v1460_v40 }
 0x157   : > { %v1425_v44 = vrot.slane %v1424_v33, 1  ;;  %v1485_v38 = vsel %vm1475_vm6, %v1461_v0, %v1462_v58  ;;  %v1488_v61 = vsel %vm1468_vm3, %v2984_v16, %v1463_v46  ;;  %1499 = vst [vmem:[%s269_s10] sm:$0xff] %v1480_v7  ;;  %v1501_v52 = vlaneseq }
 0x158   : > { %v1486_v54 = vsel %vm1477_vm7, %v1484_v31, %v1485_v38  ;;  %v1491_v26 = vsel %vm1490_vm9, %v1465_v28, %v1466_v25  ;;  %v1489_v9 = vsel %vm773_vm1, %v1488_v61, %v1464_v57 }
 0x159   : > { %v1426_v8 = vadd.f32 %v1425_v44, %v1424_v33  ;;  %v1487_v22 = vsel %vm1479_vm8, %v1483_v47, %v1486_v54  ;;  %vm1503_vm12 = vcmp.lt.s32.totalorder %v1501_v52, 656 }
 0x15a   : > { %1500 = vst [vmem:[%s269_s10 + $0x8] sm:$0xff] %v1487_v22 }
 0x15b   : > { %v1467_v30 = vrot.slane %v1426_v8, 3 }
 0x15d   : > { %v1493_v18 = vsel %vm1492_vm10, %v1491_v26, %v1467_v30 }
 0x15e   : > { %v1495_v5 = vsel %vm1494_vm11, %v1489_v9, %v1493_v18 }
 0x15f   : > { %1505 = vst.msk [vmem:[%s269_s10 + $0x10] sm:$0x3f] %vm1503_vm12, %v1495_v5 }
 0x160 PF: > { %s13_s16 = sadd.s32 1, %s1725_s16   ;;  %s3166_s12 = smov %s1717_s14 }
 0x161   : > { %p10_p7 = scmp.ge.s32.totalorder %s13_s16, 10   ;;  %s3167_s13 = smov %s1721_s15 }
 0x162   : > { %s3168_s14 = smov %s3171_s17  ;;  %s3169_s15 = smov %s3175_s18 }
 0x163   :  { %12 = sbr.rel (!%p10_p7) target bundleno = 3 (0x3), region = 68 }

</bundles_post_ra>
